<compile_context>
chip_gen: v7x
topology: tpu7x:2x2x1
jax: 0.10.0
libtpu: 0.0.40
codegen_flags: <defaults>
</compile_context>

<pallas_src>
import functools

import jax
import jax.numpy as jnp
from jax.experimental import pallas as pl
from jax.experimental.pallas import tpu as pltpu


def _spatial_attention_kernel(w_ref, x_ref, o_ref,
                              sum_ref, max_ref, pad_ref,
                              *, ksize, c_total):
    """Grid = (B, C // tc).  Channel axis is the (last, 'arbitrary') reduction axis.

    w_ref   : SMEM (2*ksize*ksize,) f32  -- conv1 weight, flattened (c, kh, kw)
    x_ref   : VMEM (1, tc, H, W)         -- channel tile of the input
    o_ref   : VMEM (1, 1, H, W)          -- output block (written at last tile)
    sum_ref : VMEM (H, W) f32            -- running channel sum
    max_ref : VMEM (H, W) f32            -- running channel max
    pad_ref : VMEM (2, H+2p, W+2p) f32   -- zero-padded [avg, max] planes
    """
    pad = (ksize - 1) // 2
    tc, H, W = x_ref.shape[1], x_ref.shape[2], x_ref.shape[3]
    c_idx = pl.program_id(1)

    @pl.when(c_idx == 0)
    def _init():
        sum_ref[...] = jnp.zeros(sum_ref.shape, sum_ref.dtype)
        max_ref[...] = jnp.full(max_ref.shape, -jnp.inf, max_ref.dtype)

    # Stream this channel tile; accumulate in f32 (leading-axis reduction: VPU only).
    x = x_ref[0].astype(jnp.float32)                      # (tc, H, W)
    sum_ref[...] = sum_ref[...] + jnp.sum(x, axis=0)
    max_ref[...] = jnp.maximum(max_ref[...], jnp.max(x, axis=0))

    @pl.when(c_idx == pl.num_programs(1) - 1)
    def _finalize():
        mean_plane = sum_ref[...] * (1.0 / c_total)        # (H, W)
        max_plane = max_ref[...]                           # (H, W)

        # Zero-padded 2-channel feature map for the halo of the k x k conv.
        pad_ref[...] = jnp.zeros(pad_ref.shape, pad_ref.dtype)
        pad_ref[0, pad:pad + H, pad:pad + W] = mean_plane
        pad_ref[1, pad:pad + H, pad:pad + W] = max_plane

        # Fully unrolled 2 x k x k taps: scalar (SMEM) weight * shifted window.
        acc = jnp.zeros((H, W), jnp.float32)
        for ci in range(2):
            for kh in range(ksize):
                for kw in range(ksize):
                    w = w_ref[ci * ksize * ksize + kh * ksize + kw]
                    acc = acc + w * pad_ref[ci, kh:kh + H, kw:kw + W]

        # sigmoid (exp on the EUP; exact reciprocal to match the reference).
        out = pl.reciprocal(1.0 + jnp.exp(-acc), approx=False)
        o_ref[0, 0] = out.astype(o_ref.dtype)


def _channel_tile(C):
    """Largest channel tile <= 128 that divides C (bounds VMEM on all TPU gens)."""
    for t in (128, 64, 32, 16, 8, 4, 2, 1):
        if C % t == 0:
            return t
    return C


def spatial_attention(x, weight, kernel_size=7):
    """x: (B, C, H, W); weight: (1, 2, k, k) conv1 weight (bias=False).

    Returns sigmoid(conv2d(concat([mean_c(x), max_c(x)]), weight)) of shape
    (B, 1, H, W), matching the PyTorch SpatialAttention forward.
    """
    assert kernel_size in (3, 7), "kernel size must be 3 or 7"
    pad = (kernel_size - 1) // 2
    B, C, H, W = x.shape
    assert weight.shape == (1, 2, kernel_size, kernel_size)

    w_flat = weight.astype(jnp.float32).reshape(-1)        # (2*k*k,) for SMEM
    tc = _channel_tile(C)
    n_ct = C // tc

    kernel = functools.partial(_spatial_attention_kernel,
                               ksize=kernel_size, c_total=C)

    out = pl.pallas_call(
        kernel,
        out_shape=jax.ShapeDtypeStruct((B, 1, H, W), x.dtype),
        grid=(B, n_ct),
        in_specs=[
            # Tiny conv weight: scalars in SMEM (broadcast-multiplied per tap).
            pl.BlockSpec(memory_space=pltpu.MemorySpace.SMEM),
            # Channel-tiled input stream: (1, tc, H, W) per grid step.
            pl.BlockSpec((1, tc, H, W), lambda b, c: (b, c, 0, 0)),
        ],
        # Output block constant across the channel axis -> resident, written once.
        out_specs=pl.BlockSpec((1, 1, H, W), lambda b, c: (b, 0, 0, 0)),
        scratch_shapes=[
            pltpu.VMEM((H, W), jnp.float32),                          # channel sum
            pltpu.VMEM((H, W), jnp.float32),                          # channel max
            pltpu.VMEM((2, H + 2 * pad, W + 2 * pad), jnp.float32),   # padded planes
        ],
        compiler_params=pltpu.CompilerParams(
            dimension_semantics=("parallel", "arbitrary"),
        ),
    )(w_flat, x)
    return out


def spatial_attention_reference(x, weight, kernel_size=7):
    """Pure-JAX reference mirroring the PyTorch forward."""
    pad = (kernel_size - 1) // 2
    avg_out = jnp.mean(x, axis=1, keepdims=True)
    max_out = jnp.max(x, axis=1, keepdims=True)
    feat = jnp.concatenate([avg_out, max_out], axis=1).astype(jnp.float32)
    out = jax.lax.conv_general_dilated(
        feat, weight.astype(jnp.float32),
        window_strides=(1, 1),
        padding=((pad, pad), (pad, pad)),
        dimension_numbers=("NCHW", "OIHW", "NCHW"),
        precision=jax.lax.Precision.HIGHEST,
    )
    return jax.nn.sigmoid(out).astype(x.dtype)


if __name__ == "__main__":
    key = jax.random.PRNGKey(0)
    kx, kw7, kw3 = jax.random.split(key, 3)

    B, C, H, W = 2, 4, 16, 16
    x = jax.random.normal(kx, (B, C, H, W), dtype=jnp.float32)

    # Conv2d(2, 1, 7, padding=3, bias=False) weight — deterministic nonzero init.
    w7 = jax.random.normal(kw7, (1, 2, 7, 7), dtype=jnp.float32) * 0.1

    out = spatial_attention(x, w7, kernel_size=7)
    jax.block_until_ready(out)

    ref = spatial_attention_reference(x, w7, kernel_size=7)
    assert out.shape == (B, 1, H, W)
    assert jnp.allclose(out, ref, atol=1e-4, rtol=1e-4), "mismatch vs reference (k=7)"

    # Also exercise the kernel_size=3 path.
    w3 = jax.random.normal(kw3, (1, 2, 3, 3), dtype=jnp.float32) * 0.1
    out3 = spatial_attention(x, w3, kernel_size=3)
    jax.block_until_ready(out3)
    ref3 = spatial_attention_reference(x, w3, kernel_size=3)
    assert jnp.allclose(out3, ref3, atol=1e-4, rtol=1e-4), "mismatch vs reference (k=3)"

    print("KERNEL_OK")
</pallas_src>

<mosaic_0001>
module attributes {stable_mosaic.version = 11 : i64} {
  func.func @_spatial_attention_kernel(%arg0: i32, %arg1: i32, %arg2: memref<98xf32, #tpu.memory_space<smem>>, %arg3: memref<1x4x16x16xf32, #tpu.memory_space<vmem>>, %arg4: memref<1x1x16x16xf32, #tpu.memory_space<vmem>>, %arg5: memref<16x16xf32, #tpu.memory_space<vmem>>, %arg6: memref<16x16xf32, #tpu.memory_space<vmem>>, %arg7: memref<2x22x22xf32, #tpu.memory_space<vmem>>) attributes {dimension_semantics = [#tpu.dimension_semantics<parallel>, #tpu.dimension_semantics<arbitrary>], iteration_bounds = array<i64: 2, 1>, scalar_prefetch = 0 : i64, scratch_operands = 3 : i64, tpu.core_type = #tpu.core_type<tc>, window_params = [{transform_indices = @transform_0, window_bounds = array<i64: 98>}, {transform_indices = @transform_1, window_bounds = array<i64: 1, 4, 16, 16>}, {transform_indices = @transform_2, window_bounds = array<i64: 1, 1, 16, 16>}]} {
    %c0_i32 = arith.constant 0 : i32
    %0 = arith.cmpi eq, %arg1, %c0_i32 : i32
    %1 = arith.extui %0 : i1 to i32
    %c0_i32_0 = arith.constant 0 : i32
    %2 = arith.cmpi ne, %1, %c0_i32_0 : i32
    scf.if %2 {
      %cst_15 = arith.constant 0.000000e+00 : f32
      %16 = vector.broadcast %cst_15 : f32 to vector<16x16xf32>
      %c0_16 = arith.constant 0 : index
      %c0_17 = arith.constant 0 : index
      %17 = vector.load %arg5[%c0_16, %c0_17] : memref<16x16xf32, #tpu.memory_space<vmem>>, vector<16x16xf32>
      tpu.vector_store %arg5[%c0_16, %c0_17], %16 {strides = array<i32>} : memref<16x16xf32, #tpu.memory_space<vmem>>, vector<16x16xf32>,
      %cst_18 = arith.constant 0xFF800000 : f32
      %18 = vector.broadcast %cst_18 : f32 to vector<16x16xf32>
      %c0_19 = arith.constant 0 : index
      %c0_20 = arith.constant 0 : index
      %19 = vector.load %arg6[%c0_19, %c0_20] : memref<16x16xf32, #tpu.memory_space<vmem>>, vector<16x16xf32>
      tpu.vector_store %arg6[%c0_19, %c0_20], %18 {strides = array<i32>} : memref<16x16xf32, #tpu.memory_space<vmem>>, vector<16x16xf32>,
    } else {
    }
    %c0 = arith.constant 0 : index
    %c0_1 = arith.constant 0 : index
    %c0_2 = arith.constant 0 : index
    %c0_3 = arith.constant 0 : index
    %3 = vector.load %arg3[%c0, %c0_1, %c0_2, %c0_3] : memref<1x4x16x16xf32, #tpu.memory_space<vmem>>, vector<1x4x16x16xf32>
    %4 = vector.shape_cast %3 : vector<1x4x16x16xf32> to vector<4x16x16xf32>
    %c0_4 = arith.constant 0 : index
    %c0_5 = arith.constant 0 : index
    %5 = vector.load %arg5[%c0_4, %c0_5] : memref<16x16xf32, #tpu.memory_space<vmem>>, vector<16x16xf32>
    %cst = arith.constant dense<0.000000e+00> : vector<16x16xf32>
    %6 = vector.multi_reduction <add>, %4, %cst [0] : vector<4x16x16xf32> to vector<16x16xf32>
    %7 = arith.addf %5, %6 : vector<16x16xf32>
    %c0_6 = arith.constant 0 : index
    %c0_7 = arith.constant 0 : index
    %8 = vector.load %arg5[%c0_6, %c0_7] : memref<16x16xf32, #tpu.memory_space<vmem>>, vector<16x16xf32>
    tpu.vector_store %arg5[%c0_6, %c0_7], %7 {strides = array<i32>} : memref<16x16xf32, #tpu.memory_space<vmem>>, vector<16x16xf32>,
    %c0_8 = arith.constant 0 : index
    %c0_9 = arith.constant 0 : index
    %9 = vector.load %arg6[%c0_8, %c0_9] : memref<16x16xf32, #tpu.memory_space<vmem>>, vector<16x16xf32>
    %cst_10 = arith.constant dense<0xFF800000> : vector<16x16xf32>
    %10 = vector.multi_reduction <maximumf>, %4, %cst_10 [0] : vector<4x16x16xf32> to vector<16x16xf32>
    %11 = arith.maximumf %9, %10 : vector<16x16xf32>
    %c0_11 = arith.constant 0 : index
    %c0_12 = arith.constant 0 : index
    %12 = vector.load %arg6[%c0_11, %c0_12] : memref<16x16xf32, #tpu.memory_space<vmem>>, vector<16x16xf32>
    tpu.vector_store %arg6[%c0_11, %c0_12], %11 {strides = array<i32>} : memref<16x16xf32, #tpu.memory_space<vmem>>, vector<16x16xf32>,
    %c0_i32_13 = arith.constant 0 : i32
    %13 = arith.cmpi eq, %arg1, %c0_i32_13 : i32
    %14 = arith.extui %13 : i1 to i32
    %c0_i32_14 = arith.constant 0 : i32
    %15 = arith.cmpi ne, %14, %c0_i32_14 : i32
    scf.if %15 {
      %c0_15 = arith.constant 0 : index
      %c0_16 = arith.constant 0 : index
      %16 = vector.load %arg5[%c0_15, %c0_16] : memref<16x16xf32, #tpu.memory_space<vmem>>, vector<16x16xf32>
      %cst_17 = arith.constant 2.500000e-01 : f32
      %17 = vector.broadcast %cst_17 : f32 to vector<16x16xf32>
      %18 = arith.mulf %16, %17 : vector<16x16xf32>
      %c0_18 = arith.constant 0 : index
      %c0_19 = arith.constant 0 : index
      %19 = vector.load %arg6[%c0_18, %c0_19] : memref<16x16xf32, #tpu.memory_space<vmem>>, vector<16x16xf32>
      %cst_20 = arith.constant 0.000000e+00 : f32
      %20 = vector.broadcast %cst_20 : f32 to vector<2x22x22xf32>
      %c0_21 = arith.constant 0 : index
      %c0_22 = arith.constant 0 : index
      %c0_23 = arith.constant 0 : index
      %21 = vector.load %arg7[%c0_21, %c0_22, %c0_23] : memref<2x22x22xf32, #tpu.memory_space<vmem>>, vector<2x22x22xf32>
      tpu.vector_store %arg7[%c0_21, %c0_22, %c0_23], %20 {strides = array<i32>} : memref<2x22x22xf32, #tpu.memory_space<vmem>>, vector<2x22x22xf32>,
      %c0_24 = arith.constant 0 : index
      %c3 = arith.constant 3 : index
      %c3_25 = arith.constant 3 : index
      %22 = vector.load %arg7[%c0_24, %c3, %c3_25] : memref<2x22x22xf32, #tpu.memory_space<vmem>>, vector<1x16x16xf32>
      %23 = vector.shape_cast %22 : vector<1x16x16xf32> to vector<16x16xf32>
      %24 = vector.shape_cast %18 : vector<16x16xf32> to vector<1x16x16xf32>
      tpu.vector_store %arg7[%c0_24, %c3, %c3_25], %24 {strides = array<i32>} : memref<2x22x22xf32, #tpu.memory_space<vmem>>, vector<1x16x16xf32>,
      %c1 = arith.constant 1 : index
      %c3_26 = arith.constant 3 : index
      %c3_27 = arith.constant 3 : index
      %25 = vector.load %arg7[%c1, %c3_26, %c3_27] : memref<2x22x22xf32, #tpu.memory_space<vmem>>, vector<1x16x16xf32>
      %26 = vector.shape_cast %25 : vector<1x16x16xf32> to vector<16x16xf32>
      %27 = vector.shape_cast %19 : vector<16x16xf32> to vector<1x16x16xf32>
      tpu.vector_store %arg7[%c1, %c3_26, %c3_27], %27 {strides = array<i32>} : memref<2x22x22xf32, #tpu.memory_space<vmem>>, vector<1x16x16xf32>,
      %cst_28 = arith.constant 0.000000e+00 : f32
      %28 = vector.broadcast %cst_28 : f32 to vector<16x16xf32>
      %c0_29 = arith.constant 0 : index
      %29 = memref.load %arg2[%c0_29] : memref<98xf32, #tpu.memory_space<smem>>
      %c0_30 = arith.constant 0 : index
      %c0_31 = arith.constant 0 : index
      %c0_32 = arith.constant 0 : index
      %30 = vector.load %arg7[%c0_30, %c0_31, %c0_32] : memref<2x22x22xf32, #tpu.memory_space<vmem>>, vector<1x16x16xf32>
      %31 = vector.shape_cast %30 : vector<1x16x16xf32> to vector<16x16xf32>
      %32 = vector.broadcast %29 : f32 to vector<16x16xf32>
      %33 = arith.mulf %32, %31 : vector<16x16xf32>
      %34 = arith.addf %28, %33 : vector<16x16xf32>
      %c1_33 = arith.constant 1 : index
      %35 = memref.load %arg2[%c1_33] : memref<98xf32, #tpu.memory_space<smem>>
      %c0_34 = arith.constant 0 : index
      %c0_35 = arith.constant 0 : index
      %c1_36 = arith.constant 1 : index
      %36 = vector.load %arg7[%c0_34, %c0_35, %c1_36] : memref<2x22x22xf32, #tpu.memory_space<vmem>>, vector<1x16x16xf32>
      %37 = vector.shape_cast %36 : vector<1x16x16xf32> to vector<16x16xf32>
      %38 = vector.broadcast %35 : f32 to vector<16x16xf32>
      %39 = arith.mulf %38, %37 : vector<16x16xf32>
      %40 = arith.addf %34, %39 : vector<16x16xf32>
      %c2 = arith.constant 2 : index
      %41 = memref.load %arg2[%c2] : memref<98xf32, #tpu.memory_space<smem>>
      %c0_37 = arith.constant 0 : index
      %c0_38 = arith.constant 0 : index
      %c2_39 = arith.constant 2 : index
      %42 = vector.load %arg7[%c0_37, %c0_38, %c2_39] : memref<2x22x22xf32, #tpu.memory_space<vmem>>, vector<1x16x16xf32>
      %43 = vector.shape_cast %42 : vector<1x16x16xf32> to vector<16x16xf32>
      %44 = vector.broadcast %41 : f32 to vector<16x16xf32>
      %45 = arith.mulf %44, %43 : vector<16x16xf32>
      %46 = arith.addf %40, %45 : vector<16x16xf32>
      %c3_40 = arith.constant 3 : index
      %47 = memref.load %arg2[%c3_40] : memref<98xf32, #tpu.memory_space<smem>>
      %c0_41 = arith.constant 0 : index
      %c0_42 = arith.constant 0 : index
      %c3_43 = arith.constant 3 : index
      %48 = vector.load %arg7[%c0_41, %c0_42, %c3_43] : memref<2x22x22xf32, #tpu.memory_space<vmem>>, vector<1x16x16xf32>
      %49 = vector.shape_cast %48 : vector<1x16x16xf32> to vector<16x16xf32>
      %50 = vector.broadcast %47 : f32 to vector<16x16xf32>
      %51 = arith.mulf %50, %49 : vector<16x16xf32>
      %52 = arith.addf %46, %51 : vector<16x16xf32>
      %c4 = arith.constant 4 : index
      %53 = memref.load %arg2[%c4] : memref<98xf32, #tpu.memory_space<smem>>
      %c0_44 = arith.constant 0 : index
      %c0_45 = arith.constant 0 : index
      %c4_46 = arith.constant 4 : index
      %54 = vector.load %arg7[%c0_44, %c0_45, %c4_46] : memref<2x22x22xf32, #tpu.memory_space<vmem>>, vector<1x16x16xf32>
      %55 = vector.shape_cast %54 : vector<1x16x16xf32> to vector<16x16xf32>
      %56 = vector.broadcast %53 : f32 to vector<16x16xf32>
      %57 = arith.mulf %56, %55 : vector<16x16xf32>
      %58 = arith.addf %52, %57 : vector<16x16xf32>
      %c5 = arith.constant 5 : index
      %59 = memref.load %arg2[%c5] : memref<98xf32, #tpu.memory_space<smem>>
      %c0_47 = arith.constant 0 : index
      %c0_48 = arith.constant 0 : index
      %c5_49 = arith.constant 5 : index
      %60 = vector.load %arg7[%c0_47, %c0_48, %c5_49] : memref<2x22x22xf32, #tpu.memory_space<vmem>>, vector<1x16x16xf32>
      %61 = vector.shape_cast %60 : vector<1x16x16xf32> to vector<16x16xf32>
      %62 = vector.broadcast %59 : f32 to vector<16x16xf32>
      %63 = arith.mulf %62, %61 : vector<16x16xf32>
      %64 = arith.addf %58, %63 : vector<16x16xf32>
      %c6 = arith.constant 6 : index
      %65 = memref.load %arg2[%c6] : memref<98xf32, #tpu.memory_space<smem>>
      %c0_50 = arith.constant 0 : index
      %c0_51 = arith.constant 0 : index
      %c6_52 = arith.constant 6 : index
      %66 = vector.load %arg7[%c0_50, %c0_51, %c6_52] : memref<2x22x22xf32, #tpu.memory_space<vmem>>, vector<1x16x16xf32>
      %67 = vector.shape_cast %66 : vector<1x16x16xf32> to vector<16x16xf32>
      %68 = vector.broadcast %65 : f32 to vector<16x16xf32>
      %69 = arith.mulf %68, %67 : vector<16x16xf32>
      %70 = arith.addf %64, %69 : vector<16x16xf32>
      %c7 = arith.constant 7 : index
      %71 = memref.load %arg2[%c7] : memref<98xf32, #tpu.memory_space<smem>>
      %c0_53 = arith.constant 0 : index
      %c1_54 = arith.constant 1 : index
      %c0_55 = arith.constant 0 : index
      %72 = vector.load %arg7[%c0_53, %c1_54, %c0_55] : memref<2x22x22xf32, #tpu.memory_space<vmem>>, vector<1x16x16xf32>
      %73 = vector.shape_cast %72 : vector<1x16x16xf32> to vector<16x16xf32>
      %74 = vector.broadcast %71 : f32 to vector<16x16xf32>
      %75 = arith.mulf %74, %73 : vector<16x16xf32>
      %76 = arith.addf %70, %75 : vector<16x16xf32>
      %c8 = arith.constant 8 : index
      %77 = memref.load %arg2[%c8] : memref<98xf32, #tpu.memory_space<smem>>
      %c0_56 = arith.constant 0 : index
      %c1_57 = arith.constant 1 : index
      %c1_58 = arith.constant 1 : index
      %78 = vector.load %arg7[%c0_56, %c1_57, %c1_58] : memref<2x22x22xf32, #tpu.memory_space<vmem>>, vector<1x16x16xf32>
      %79 = vector.shape_cast %78 : vector<1x16x16xf32> to vector<16x16xf32>
      %80 = vector.broadcast %77 : f32 to vector<16x16xf32>
      %81 = arith.mulf %80, %79 : vector<16x16xf32>
      %82 = arith.addf %76, %81 : vector<16x16xf32>
      %c9 = arith.constant 9 : index
      %83 = memref.load %arg2[%c9] : memref<98xf32, #tpu.memory_space<smem>>
      %c0_59 = arith.constant 0 : index
      %c1_60 = arith.constant 1 : index
      %c2_61 = arith.constant 2 : index
      %84 = vector.load %arg7[%c0_59, %c1_60, %c2_61] : memref<2x22x22xf32, #tpu.memory_space<vmem>>, vector<1x16x16xf32>
      %85 = vector.shape_cast %84 : vector<1x16x16xf32> to vector<16x16xf32>
      %86 = vector.broadcast %83 : f32 to vector<16x16xf32>
      %87 = arith.mulf %86, %85 : vector<16x16xf32>
      %88 = arith.addf %82, %87 : vector<16x16xf32>
      %c10 = arith.constant 10 : index
      %89 = memref.load %arg2[%c10] : memref<98xf32, #tpu.memory_space<smem>>
      %c0_62 = arith.constant 0 : index
      %c1_63 = arith.constant 1 : index
      %c3_64 = arith.constant 3 : index
      %90 = vector.load %arg7[%c0_62, %c1_63, %c3_64] : memref<2x22x22xf32, #tpu.memory_space<vmem>>, vector<1x16x16xf32>
      %91 = vector.shape_cast %90 : vector<1x16x16xf32> to vector<16x16xf32>
      %92 = vector.broadcast %89 : f32 to vector<16x16xf32>
      %93 = arith.mulf %92, %91 : vector<16x16xf32>
      %94 = arith.addf %88, %93 : vector<16x16xf32>
      %c11 = arith.constant 11 : index
      %95 = memref.load %arg2[%c11] : memref<98xf32, #tpu.memory_space<smem>>
      %c0_65 = arith.constant 0 : index
      %c1_66 = arith.constant 1 : index
      %c4_67 = arith.constant 4 : index
      %96 = vector.load %arg7[%c0_65, %c1_66, %c4_67] : memref<2x22x22xf32, #tpu.memory_space<vmem>>, vector<1x16x16xf32>
      %97 = vector.shape_cast %96 : vector<1x16x16xf32> to vector<16x16xf32>
      %98 = vector.broadcast %95 : f32 to vector<16x16xf32>
      %99 = arith.mulf %98, %97 : vector<16x16xf32>
      %100 = arith.addf %94, %99 : vector<16x16xf32>
      %c12 = arith.constant 12 : index
      %101 = memref.load %arg2[%c12] : memref<98xf32, #tpu.memory_space<smem>>
      %c0_68 = arith.constant 0 : index
      %c1_69 = arith.constant 1 : index
      %c5_70 = arith.constant 5 : index
      %102 = vector.load %arg7[%c0_68, %c1_69, %c5_70] : memref<2x22x22xf32, #tpu.memory_space<vmem>>, vector<1x16x16xf32>
      %103 = vector.shape_cast %102 : vector<1x16x16xf32> to vector<16x16xf32>
      %104 = vector.broadcast %101 : f32 to vector<16x16xf32>
      %105 = arith.mulf %104, %103 : vector<16x16xf32>
      %106 = arith.addf %100, %105 : vector<16x16xf32>
      %c13 = arith.constant 13 : index
      %107 = memref.load %arg2[%c13] : memref<98xf32, #tpu.memory_space<smem>>
      %c0_71 = arith.constant 0 : index
      %c1_72 = arith.constant 1 : index
      %c6_73 = arith.constant 6 : index
      %108 = vector.load %arg7[%c0_71, %c1_72, %c6_73] : memref<2x22x22xf32, #tpu.memory_space<vmem>>, vector<1x16x16xf32>
      %109 = vector.shape_cast %108 : vector<1x16x16xf32> to vector<16x16xf32>
      %110 = vector.broadcast %107 : f32 to vector<16x16xf32>
      %111 = arith.mulf %110, %109 : vector<16x16xf32>
      %112 = arith.addf %106, %111 : vector<16x16xf32>
      %c14 = arith.constant 14 : index
      %113 = memref.load %arg2[%c14] : memref<98xf32, #tpu.memory_space<smem>>
      %c0_74 = arith.constant 0 : index
      %c2_75 = arith.constant 2 : index
      %c0_76 = arith.constant 0 : index
      %114 = vector.load %arg7[%c0_74, %c2_75, %c0_76] : memref<2x22x22xf32, #tpu.memory_space<vmem>>, vector<1x16x16xf32>
      %115 = vector.shape_cast %114 : vector<1x16x16xf32> to vector<16x16xf32>
      %116 = vector.broadcast %113 : f32 to vector<16x16xf32>
      %117 = arith.mulf %116, %115 : vector<16x16xf32>
      %118 = arith.addf %112, %117 : vector<16x16xf32>
      %c15 = arith.constant 15 : index
      %119 = memref.load %arg2[%c15] : memref<98xf32, #tpu.memory_space<smem>>
      %c0_77 = arith.constant 0 : index
      %c2_78 = arith.constant 2 : index
      %c1_79 = arith.constant 1 : index
      %120 = vector.load %arg7[%c0_77, %c2_78, %c1_79] : memref<2x22x22xf32, #tpu.memory_space<vmem>>, vector<1x16x16xf32>
      %121 = vector.shape_cast %120 : vector<1x16x16xf32> to vector<16x16xf32>
      %122 = vector.broadcast %119 : f32 to vector<16x16xf32>
      %123 = arith.mulf %122, %121 : vector<16x16xf32>
      %124 = arith.addf %118, %123 : vector<16x16xf32>
      %c16 = arith.constant 16 : index
      %125 = memref.load %arg2[%c16] : memref<98xf32, #tpu.memory_space<smem>>
      %c0_80 = arith.constant 0 : index
      %c2_81 = arith.constant 2 : index
      %c2_82 = arith.constant 2 : index
      %126 = vector.load %arg7[%c0_80, %c2_81, %c2_82] : memref<2x22x22xf32, #tpu.memory_space<vmem>>, vector<1x16x16xf32>
      %127 = vector.shape_cast %126 : vector<1x16x16xf32> to vector<16x16xf32>
      %128 = vector.broadcast %125 : f32 to vector<16x16xf32>
      %129 = arith.mulf %128, %127 : vector<16x16xf32>
      %130 = arith.addf %124, %129 : vector<16x16xf32>
      %c17 = arith.constant 17 : index
      %131 = memref.load %arg2[%c17] : memref<98xf32, #tpu.memory_space<smem>>
      %c0_83 = arith.constant 0 : index
      %c2_84 = arith.constant 2 : index
      %c3_85 = arith.constant 3 : index
      %132 = vector.load %arg7[%c0_83, %c2_84, %c3_85] : memref<2x22x22xf32, #tpu.memory_space<vmem>>, vector<1x16x16xf32>
      %133 = vector.shape_cast %132 : vector<1x16x16xf32> to vector<16x16xf32>
      %134 = vector.broadcast %131 : f32 to vector<16x16xf32>
      %135 = arith.mulf %134, %133 : vector<16x16xf32>
      %136 = arith.addf %130, %135 : vector<16x16xf32>
      %c18 = arith.constant 18 : index
      %137 = memref.load %arg2[%c18] : memref<98xf32, #tpu.memory_space<smem>>
      %c0_86 = arith.constant 0 : index
      %c2_87 = arith.constant 2 : index
      %c4_88 = arith.constant 4 : index
      %138 = vector.load %arg7[%c0_86, %c2_87, %c4_88] : memref<2x22x22xf32, #tpu.memory_space<vmem>>, vector<1x16x16xf32>
      %139 = vector.shape_cast %138 : vector<1x16x16xf32> to vector<16x16xf32>
      %140 = vector.broadcast %137 : f32 to vector<16x16xf32>
      %141 = arith.mulf %140, %139 : vector<16x16xf32>
      %142 = arith.addf %136, %141 : vector<16x16xf32>
      %c19 = arith.constant 19 : index
      %143 = memref.load %arg2[%c19] : memref<98xf32, #tpu.memory_space<smem>>
      %c0_89 = arith.constant 0 : index
      %c2_90 = arith.constant 2 : index
      %c5_91 = arith.constant 5 : index
      %144 = vector.load %arg7[%c0_89, %c2_90, %c5_91] : memref<2x22x22xf32, #tpu.memory_space<vmem>>, vector<1x16x16xf32>
      %145 = vector.shape_cast %144 : vector<1x16x16xf32> to vector<16x16xf32>
      %146 = vector.broadcast %143 : f32 to vector<16x16xf32>
      %147 = arith.mulf %146, %145 : vector<16x16xf32>
      %148 = arith.addf %142, %147 : vector<16x16xf32>
      %c20 = arith.constant 20 : index
      %149 = memref.load %arg2[%c20] : memref<98xf32, #tpu.memory_space<smem>>
      %c0_92 = arith.constant 0 : index
      %c2_93 = arith.constant 2 : index
      %c6_94 = arith.constant 6 : index
      %150 = vector.load %arg7[%c0_92, %c2_93, %c6_94] : memref<2x22x22xf32, #tpu.memory_space<vmem>>, vector<1x16x16xf32>
      %151 = vector.shape_cast %150 : vector<1x16x16xf32> to vector<16x16xf32>
      %152 = vector.broadcast %149 : f32 to vector<16x16xf32>
      %153 = arith.mulf %152, %151 : vector<16x16xf32>
      %154 = arith.addf %148, %153 : vector<16x16xf32>
      %c21 = arith.constant 21 : index
      %155 = memref.load %arg2[%c21] : memref<98xf32, #tpu.memory_space<smem>>
      %c0_95 = arith.constant 0 : index
      %c3_96 = arith.constant 3 : index
      %c0_97 = arith.constant 0 : index
      %156 = vector.load %arg7[%c0_95, %c3_96, %c0_97] : memref<2x22x22xf32, #tpu.memory_space<vmem>>, vector<1x16x16xf32>
      %157 = vector.shape_cast %156 : vector<1x16x16xf32> to vector<16x16xf32>
      %158 = vector.broadcast %155 : f32 to vector<16x16xf32>
      %159 = arith.mulf %158, %157 : vector<16x16xf32>
      %160 = arith.addf %154, %159 : vector<16x16xf32>
      %c22 = arith.constant 22 : index
      %161 = memref.load %arg2[%c22] : memref<98xf32, #tpu.memory_space<smem>>
      %c0_98 = arith.constant 0 : index
      %c3_99 = arith.constant 3 : index
      %c1_100 = arith.constant 1 : index
      %162 = vector.load %arg7[%c0_98, %c3_99, %c1_100] : memref<2x22x22xf32, #tpu.memory_space<vmem>>, vector<1x16x16xf32>
      %163 = vector.shape_cast %162 : vector<1x16x16xf32> to vector<16x16xf32>
      %164 = vector.broadcast %161 : f32 to vector<16x16xf32>
      %165 = arith.mulf %164, %163 : vector<16x16xf32>
      %166 = arith.addf %160, %165 : vector<16x16xf32>
      %c23 = arith.constant 23 : index
      %167 = memref.load %arg2[%c23] : memref<98xf32, #tpu.memory_space<smem>>
      %c0_101 = arith.constant 0 : index
      %c3_102 = arith.constant 3 : index
      %c2_103 = arith.constant 2 : index
      %168 = vector.load %arg7[%c0_101, %c3_102, %c2_103] : memref<2x22x22xf32, #tpu.memory_space<vmem>>, vector<1x16x16xf32>
      %169 = vector.shape_cast %168 : vector<1x16x16xf32> to vector<16x16xf32>
      %170 = vector.broadcast %167 : f32 to vector<16x16xf32>
      %171 = arith.mulf %170, %169 : vector<16x16xf32>
      %172 = arith.addf %166, %171 : vector<16x16xf32>
      %c24 = arith.constant 24 : index
      %173 = memref.load %arg2[%c24] : memref<98xf32, #tpu.memory_space<smem>>
      %c0_104 = arith.constant 0 : index
      %c3_105 = arith.constant 3 : index
      %c3_106 = arith.constant 3 : index
      %174 = vector.load %arg7[%c0_104, %c3_105, %c3_106] : memref<2x22x22xf32, #tpu.memory_space<vmem>>, vector<1x16x16xf32>
      %175 = vector.shape_cast %174 : vector<1x16x16xf32> to vector<16x16xf32>
      %176 = vector.broadcast %173 : f32 to vector<16x16xf32>
      %177 = arith.mulf %176, %175 : vector<16x16xf32>
      %178 = arith.addf %172, %177 : vector<16x16xf32>
      %c25 = arith.constant 25 : index
      %179 = memref.load %arg2[%c25] : memref<98xf32, #tpu.memory_space<smem>>
      %c0_107 = arith.constant 0 : index
      %c3_108 = arith.constant 3 : index
      %c4_109 = arith.constant 4 : index
      %180 = vector.load %arg7[%c0_107, %c3_108, %c4_109] : memref<2x22x22xf32, #tpu.memory_space<vmem>>, vector<1x16x16xf32>
      %181 = vector.shape_cast %180 : vector<1x16x16xf32> to vector<16x16xf32>
      %182 = vector.broadcast %179 : f32 to vector<16x16xf32>
      %183 = arith.mulf %182, %181 : vector<16x16xf32>
      %184 = arith.addf %178, %183 : vector<16x16xf32>
      %c26 = arith.constant 26 : index
      %185 = memref.load %arg2[%c26] : memref<98xf32, #tpu.memory_space<smem>>
      %c0_110 = arith.constant 0 : index
      %c3_111 = arith.constant 3 : index
      %c5_112 = arith.constant 5 : index
      %186 = vector.load %arg7[%c0_110, %c3_111, %c5_112] : memref<2x22x22xf32, #tpu.memory_space<vmem>>, vector<1x16x16xf32>
      %187 = vector.shape_cast %186 : vector<1x16x16xf32> to vector<16x16xf32>
      %188 = vector.broadcast %185 : f32 to vector<16x16xf32>
      %189 = arith.mulf %188, %187 : vector<16x16xf32>
      %190 = arith.addf %184, %189 : vector<16x16xf32>
      %c27 = arith.constant 27 : index
      %191 = memref.load %arg2[%c27] : memref<98xf32, #tpu.memory_space<smem>>
      %c0_113 = arith.constant 0 : index
      %c3_114 = arith.constant 3 : index
      %c6_115 = arith.constant 6 : index
      %192 = vector.load %arg7[%c0_113, %c3_114, %c6_115] : memref<2x22x22xf32, #tpu.memory_space<vmem>>, vector<1x16x16xf32>
      %193 = vector.shape_cast %192 : vector<1x16x16xf32> to vector<16x16xf32>
      %194 = vector.broadcast %191 : f32 to vector<16x16xf32>
      %195 = arith.mulf %194, %193 : vector<16x16xf32>
      %196 = arith.addf %190, %195 : vector<16x16xf32>
      %c28 = arith.constant 28 : index
      %197 = memref.load %arg2[%c28] : memref<98xf32, #tpu.memory_space<smem>>
      %c0_116 = arith.constant 0 : index
      %c4_117 = arith.constant 4 : index
      %c0_118 = arith.constant 0 : index
      %198 = vector.load %arg7[%c0_116, %c4_117, %c0_118] : memref<2x22x22xf32, #tpu.memory_space<vmem>>, vector<1x16x16xf32>
      %199 = vector.shape_cast %198 : vector<1x16x16xf32> to vector<16x16xf32>
      %200 = vector.broadcast %197 : f32 to vector<16x16xf32>
      %201 = arith.mulf %200, %199 : vector<16x16xf32>
      %202 = arith.addf %196, %201 : vector<16x16xf32>
      %c29 = arith.constant 29 : index
      %203 = memref.load %arg2[%c29] : memref<98xf32, #tpu.memory_space<smem>>
      %c0_119 = arith.constant 0 : index
      %c4_120 = arith.constant 4 : index
      %c1_121 = arith.constant 1 : index
      %204 = vector.load %arg7[%c0_119, %c4_120, %c1_121] : memref<2x22x22xf32, #tpu.memory_space<vmem>>, vector<1x16x16xf32>
      %205 = vector.shape_cast %204 : vector<1x16x16xf32> to vector<16x16xf32>
      %206 = vector.broadcast %203 : f32 to vector<16x16xf32>
      %207 = arith.mulf %206, %205 : vector<16x16xf32>
      %208 = arith.addf %202, %207 : vector<16x16xf32>
      %c30 = arith.constant 30 : index
      %209 = memref.load %arg2[%c30] : memref<98xf32, #tpu.memory_space<smem>>
      %c0_122 = arith.constant 0 : index
      %c4_123 = arith.constant 4 : index
      %c2_124 = arith.constant 2 : index
      %210 = vector.load %arg7[%c0_122, %c4_123, %c2_124] : memref<2x22x22xf32, #tpu.memory_space<vmem>>, vector<1x16x16xf32>
      %211 = vector.shape_cast %210 : vector<1x16x16xf32> to vector<16x16xf32>
      %212 = vector.broadcast %209 : f32 to vector<16x16xf32>
      %213 = arith.mulf %212, %211 : vector<16x16xf32>
      %214 = arith.addf %208, %213 : vector<16x16xf32>
      %c31 = arith.constant 31 : index
      %215 = memref.load %arg2[%c31] : memref<98xf32, #tpu.memory_space<smem>>
      %c0_125 = arith.constant 0 : index
      %c4_126 = arith.constant 4 : index
      %c3_127 = arith.constant 3 : index
      %216 = vector.load %arg7[%c0_125, %c4_126, %c3_127] : memref<2x22x22xf32, #tpu.memory_space<vmem>>, vector<1x16x16xf32>
      %217 = vector.shape_cast %216 : vector<1x16x16xf32> to vector<16x16xf32>
      %218 = vector.broadcast %215 : f32 to vector<16x16xf32>
      %219 = arith.mulf %218, %217 : vector<16x16xf32>
      %220 = arith.addf %214, %219 : vector<16x16xf32>
      %c32 = arith.constant 32 : index
      %221 = memref.load %arg2[%c32] : memref<98xf32, #tpu.memory_space<smem>>
      %c0_128 = arith.constant 0 : index
      %c4_129 = arith.constant 4 : index
      %c4_130 = arith.constant 4 : index
      %222 = vector.load %arg7[%c0_128, %c4_129, %c4_130] : memref<2x22x22xf32, #tpu.memory_space<vmem>>, vector<1x16x16xf32>
      %223 = vector.shape_cast %222 : vector<1x16x16xf32> to vector<16x16xf32>
      %224 = vector.broadcast %221 : f32 to vector<16x16xf32>
      %225 = arith.mulf %224, %223 : vector<16x16xf32>
      %226 = arith.addf %220, %225 : vector<16x16xf32>
      %c33 = arith.constant 33 : index
      %227 = memref.load %arg2[%c33] : memref<98xf32, #tpu.memory_space<smem>>
      %c0_131 = arith.constant 0 : index
      %c4_132 = arith.constant 4 : index
      %c5_133 = arith.constant 5 : index
      %228 = vector.load %arg7[%c0_131, %c4_132, %c5_133] : memref<2x22x22xf32, #tpu.memory_space<vmem>>, vector<1x16x16xf32>
      %229 = vector.shape_cast %228 : vector<1x16x16xf32> to vector<16x16xf32>
      %230 = vector.broadcast %227 : f32 to vector<16x16xf32>
      %231 = arith.mulf %230, %229 : vector<16x16xf32>
      %232 = arith.addf %226, %231 : vector<16x16xf32>
      %c34 = arith.constant 34 : index
      %233 = memref.load %arg2[%c34] : memref<98xf32, #tpu.memory_space<smem>>
      %c0_134 = arith.constant 0 : index
      %c4_135 = arith.constant 4 : index
      %c6_136 = arith.constant 6 : index
      %234 = vector.load %arg7[%c0_134, %c4_135, %c6_136] : memref<2x22x22xf32, #tpu.memory_space<vmem>>, vector<1x16x16xf32>
      %235 = vector.shape_cast %234 : vector<1x16x16xf32> to vector<16x16xf32>
      %236 = vector.broadcast %233 : f32 to vector<16x16xf32>
      %237 = arith.mulf %236, %235 : vector<16x16xf32>
      %238 = arith.addf %232, %237 : vector<16x16xf32>
      %c35 = arith.constant 35 : index
      %239 = memref.load %arg2[%c35] : memref<98xf32, #tpu.memory_space<smem>>
      %c0_137 = arith.constant 0 : index
      %c5_138 = arith.constant 5 : index
      %c0_139 = arith.constant 0 : index
      %240 = vector.load %arg7[%c0_137, %c5_138, %c0_139] : memref<2x22x22xf32, #tpu.memory_space<vmem>>, vector<1x16x16xf32>
      %241 = vector.shape_cast %240 : vector<1x16x16xf32> to vector<16x16xf32>
      %242 = vector.broadcast %239 : f32 to vector<16x16xf32>
      %243 = arith.mulf %242, %241 : vector<16x16xf32>
      %244 = arith.addf %238, %243 : vector<16x16xf32>
      %c36 = arith.constant 36 : index
      %245 = memref.load %arg2[%c36] : memref<98xf32, #tpu.memory_space<smem>>
      %c0_140 = arith.constant 0 : index
      %c5_141 = arith.constant 5 : index
      %c1_142 = arith.constant 1 : index
      %246 = vector.load %arg7[%c0_140, %c5_141, %c1_142] : memref<2x22x22xf32, #tpu.memory_space<vmem>>, vector<1x16x16xf32>
      %247 = vector.shape_cast %246 : vector<1x16x16xf32> to vector<16x16xf32>
      %248 = vector.broadcast %245 : f32 to vector<16x16xf32>
      %249 = arith.mulf %248, %247 : vector<16x16xf32>
      %250 = arith.addf %244, %249 : vector<16x16xf32>
      %c37 = arith.constant 37 : index
      %251 = memref.load %arg2[%c37] : memref<98xf32, #tpu.memory_space<smem>>
      %c0_143 = arith.constant 0 : index
      %c5_144 = arith.constant 5 : index
      %c2_145 = arith.constant 2 : index
      %252 = vector.load %arg7[%c0_143, %c5_144, %c2_145] : memref<2x22x22xf32, #tpu.memory_space<vmem>>, vector<1x16x16xf32>
      %253 = vector.shape_cast %252 : vector<1x16x16xf32> to vector<16x16xf32>
      %254 = vector.broadcast %251 : f32 to vector<16x16xf32>
      %255 = arith.mulf %254, %253 : vector<16x16xf32>
      %256 = arith.addf %250, %255 : vector<16x16xf32>
      %c38 = arith.constant 38 : index
      %257 = memref.load %arg2[%c38] : memref<98xf32, #tpu.memory_space<smem>>
      %c0_146 = arith.constant 0 : index
      %c5_147 = arith.constant 5 : index
      %c3_148 = arith.constant 3 : index
      %258 = vector.load %arg7[%c0_146, %c5_147, %c3_148] : memref<2x22x22xf32, #tpu.memory_space<vmem>>, vector<1x16x16xf32>
      %259 = vector.shape_cast %258 : vector<1x16x16xf32> to vector<16x16xf32>
      %260 = vector.broadcast %257 : f32 to vector<16x16xf32>
      %261 = arith.mulf %260, %259 : vector<16x16xf32>
      %262 = arith.addf %256, %261 : vector<16x16xf32>
      %c39 = arith.constant 39 : index
      %263 = memref.load %arg2[%c39] : memref<98xf32, #tpu.memory_space<smem>>
      %c0_149 = arith.constant 0 : index
      %c5_150 = arith.constant 5 : index
      %c4_151 = arith.constant 4 : index
      %264 = vector.load %arg7[%c0_149, %c5_150, %c4_151] : memref<2x22x22xf32, #tpu.memory_space<vmem>>, vector<1x16x16xf32>
      %265 = vector.shape_cast %264 : vector<1x16x16xf32> to vector<16x16xf32>
      %266 = vector.broadcast %263 : f32 to vector<16x16xf32>
      %267 = arith.mulf %266, %265 : vector<16x16xf32>
      %268 = arith.addf %262, %267 : vector<16x16xf32>
      %c40 = arith.constant 40 : index
      %269 = memref.load %arg2[%c40] : memref<98xf32, #tpu.memory_space<smem>>
      %c0_152 = arith.constant 0 : index
      %c5_153 = arith.constant 5 : index
      %c5_154 = arith.constant 5 : index
      %270 = vector.load %arg7[%c0_152, %c5_153, %c5_154] : memref<2x22x22xf32, #tpu.memory_space<vmem>>, vector<1x16x16xf32>
      %271 = vector.shape_cast %270 : vector<1x16x16xf32> to vector<16x16xf32>
      %272 = vector.broadcast %269 : f32 to vector<16x16xf32>
      %273 = arith.mulf %272, %271 : vector<16x16xf32>
      %274 = arith.addf %268, %273 : vector<16x16xf32>
      %c41 = arith.constant 41 : index
      %275 = memref.load %arg2[%c41] : memref<98xf32, #tpu.memory_space<smem>>
      %c0_155 = arith.constant 0 : index
      %c5_156 = arith.constant 5 : index
      %c6_157 = arith.constant 6 : index
      %276 = vector.load %arg7[%c0_155, %c5_156, %c6_157] : memref<2x22x22xf32, #tpu.memory_space<vmem>>, vector<1x16x16xf32>
      %277 = vector.shape_cast %276 : vector<1x16x16xf32> to vector<16x16xf32>
      %278 = vector.broadcast %275 : f32 to vector<16x16xf32>
      %279 = arith.mulf %278, %277 : vector<16x16xf32>
      %280 = arith.addf %274, %279 : vector<16x16xf32>
      %c42 = arith.constant 42 : index
      %281 = memref.load %arg2[%c42] : memref<98xf32, #tpu.memory_space<smem>>
      %c0_158 = arith.constant 0 : index
      %c6_159 = arith.constant 6 : index
      %c0_160 = arith.constant 0 : index
      %282 = vector.load %arg7[%c0_158, %c6_159, %c0_160] : memref<2x22x22xf32, #tpu.memory_space<vmem>>, vector<1x16x16xf32>
      %283 = vector.shape_cast %282 : vector<1x16x16xf32> to vector<16x16xf32>
      %284 = vector.broadcast %281 : f32 to vector<16x16xf32>
      %285 = arith.mulf %284, %283 : vector<16x16xf32>
      %286 = arith.addf %280, %285 : vector<16x16xf32>
      %c43 = arith.constant 43 : index
      %287 = memref.load %arg2[%c43] : memref<98xf32, #tpu.memory_space<smem>>
      %c0_161 = arith.constant 0 : index
      %c6_162 = arith.constant 6 : index
      %c1_163 = arith.constant 1 : index
      %288 = vector.load %arg7[%c0_161, %c6_162, %c1_163] : memref<2x22x22xf32, #tpu.memory_space<vmem>>, vector<1x16x16xf32>
      %289 = vector.shape_cast %288 : vector<1x16x16xf32> to vector<16x16xf32>
      %290 = vector.broadcast %287 : f32 to vector<16x16xf32>
      %291 = arith.mulf %290, %289 : vector<16x16xf32>
      %292 = arith.addf %286, %291 : vector<16x16xf32>
      %c44 = arith.constant 44 : index
      %293 = memref.load %arg2[%c44] : memref<98xf32, #tpu.memory_space<smem>>
      %c0_164 = arith.constant 0 : index
      %c6_165 = arith.constant 6 : index
      %c2_166 = arith.constant 2 : index
      %294 = vector.load %arg7[%c0_164, %c6_165, %c2_166] : memref<2x22x22xf32, #tpu.memory_space<vmem>>, vector<1x16x16xf32>
      %295 = vector.shape_cast %294 : vector<1x16x16xf32> to vector<16x16xf32>
      %296 = vector.broadcast %293 : f32 to vector<16x16xf32>
      %297 = arith.mulf %296, %295 : vector<16x16xf32>
      %298 = arith.addf %292, %297 : vector<16x16xf32>
      %c45 = arith.constant 45 : index
      %299 = memref.load %arg2[%c45] : memref<98xf32, #tpu.memory_space<smem>>
      %c0_167 = arith.constant 0 : index
      %c6_168 = arith.constant 6 : index
      %c3_169 = arith.constant 3 : index
      %300 = vector.load %arg7[%c0_167, %c6_168, %c3_169] : memref<2x22x22xf32, #tpu.memory_space<vmem>>, vector<1x16x16xf32>
      %301 = vector.shape_cast %300 : vector<1x16x16xf32> to vector<16x16xf32>
      %302 = vector.broadcast %299 : f32 to vector<16x16xf32>
      %303 = arith.mulf %302, %301 : vector<16x16xf32>
      %304 = arith.addf %298, %303 : vector<16x16xf32>
      %c46 = arith.constant 46 : index
      %305 = memref.load %arg2[%c46] : memref<98xf32, #tpu.memory_space<smem>>
      %c0_170 = arith.constant 0 : index
      %c6_171 = arith.constant 6 : index
      %c4_172 = arith.constant 4 : index
      %306 = vector.load %arg7[%c0_170, %c6_171, %c4_172] : memref<2x22x22xf32, #tpu.memory_space<vmem>>, vector<1x16x16xf32>
      %307 = vector.shape_cast %306 : vector<1x16x16xf32> to vector<16x16xf32>
      %308 = vector.broadcast %305 : f32 to vector<16x16xf32>
      %309 = arith.mulf %308, %307 : vector<16x16xf32>
      %310 = arith.addf %304, %309 : vector<16x16xf32>
      %c47 = arith.constant 47 : index
      %311 = memref.load %arg2[%c47] : memref<98xf32, #tpu.memory_space<smem>>
      %c0_173 = arith.constant 0 : index
      %c6_174 = arith.constant 6 : index
      %c5_175 = arith.constant 5 : index
      %312 = vector.load %arg7[%c0_173, %c6_174, %c5_175] : memref<2x22x22xf32, #tpu.memory_space<vmem>>, vector<1x16x16xf32>
      %313 = vector.shape_cast %312 : vector<1x16x16xf32> to vector<16x16xf32>
      %314 = vector.broadcast %311 : f32 to vector<16x16xf32>
      %315 = arith.mulf %314, %313 : vector<16x16xf32>
      %316 = arith.addf %310, %315 : vector<16x16xf32>
      %c48 = arith.constant 48 : index
      %317 = memref.load %arg2[%c48] : memref<98xf32, #tpu.memory_space<smem>>
      %c0_176 = arith.constant 0 : index
      %c6_177 = arith.constant 6 : index
      %c6_178 = arith.constant 6 : index
      %318 = vector.load %arg7[%c0_176, %c6_177, %c6_178] : memref<2x22x22xf32, #tpu.memory_space<vmem>>, vector<1x16x16xf32>
      %319 = vector.shape_cast %318 : vector<1x16x16xf32> to vector<16x16xf32>
      %320 = vector.broadcast %317 : f32 to vector<16x16xf32>
      %321 = arith.mulf %320, %319 : vector<16x16xf32>
      %322 = arith.addf %316, %321 : vector<16x16xf32>
      %c49 = arith.constant 49 : index
      %323 = memref.load %arg2[%c49] : memref<98xf32, #tpu.memory_space<smem>>
      %c1_179 = arith.constant 1 : index
      %c0_180 = arith.constant 0 : index
      %c0_181 = arith.constant 0 : index
      %324 = vector.load %arg7[%c1_179, %c0_180, %c0_181] : memref<2x22x22xf32, #tpu.memory_space<vmem>>, vector<1x16x16xf32>
      %325 = vector.shape_cast %324 : vector<1x16x16xf32> to vector<16x16xf32>
      %326 = vector.broadcast %323 : f32 to vector<16x16xf32>
      %327 = arith.mulf %326, %325 : vector<16x16xf32>
      %328 = arith.addf %322, %327 : vector<16x16xf32>
      %c50 = arith.constant 50 : index
      %329 = memref.load %arg2[%c50] : memref<98xf32, #tpu.memory_space<smem>>
      %c1_182 = arith.constant 1 : index
      %c0_183 = arith.constant 0 : index
      %c1_184 = arith.constant 1 : index
      %330 = vector.load %arg7[%c1_182, %c0_183, %c1_184] : memref<2x22x22xf32, #tpu.memory_space<vmem>>, vector<1x16x16xf32>
      %331 = vector.shape_cast %330 : vector<1x16x16xf32> to vector<16x16xf32>
      %332 = vector.broadcast %329 : f32 to vector<16x16xf32>
      %333 = arith.mulf %332, %331 : vector<16x16xf32>
      %334 = arith.addf %328, %333 : vector<16x16xf32>
      %c51 = arith.constant 51 : index
      %335 = memref.load %arg2[%c51] : memref<98xf32, #tpu.memory_space<smem>>
      %c1_185 = arith.constant 1 : index
      %c0_186 = arith.constant 0 : index
      %c2_187 = arith.constant 2 : index
      %336 = vector.load %arg7[%c1_185, %c0_186, %c2_187] : memref<2x22x22xf32, #tpu.memory_space<vmem>>, vector<1x16x16xf32>
      %337 = vector.shape_cast %336 : vector<1x16x16xf32> to vector<16x16xf32>
      %338 = vector.broadcast %335 : f32 to vector<16x16xf32>
      %339 = arith.mulf %338, %337 : vector<16x16xf32>
      %340 = arith.addf %334, %339 : vector<16x16xf32>
      %c52 = arith.constant 52 : index
      %341 = memref.load %arg2[%c52] : memref<98xf32, #tpu.memory_space<smem>>
      %c1_188 = arith.constant 1 : index
      %c0_189 = arith.constant 0 : index
      %c3_190 = arith.constant 3 : index
      %342 = vector.load %arg7[%c1_188, %c0_189, %c3_190] : memref<2x22x22xf32, #tpu.memory_space<vmem>>, vector<1x16x16xf32>
      %343 = vector.shape_cast %342 : vector<1x16x16xf32> to vector<16x16xf32>
      %344 = vector.broadcast %341 : f32 to vector<16x16xf32>
      %345 = arith.mulf %344, %343 : vector<16x16xf32>
      %346 = arith.addf %340, %345 : vector<16x16xf32>
      %c53 = arith.constant 53 : index
      %347 = memref.load %arg2[%c53] : memref<98xf32, #tpu.memory_space<smem>>
      %c1_191 = arith.constant 1 : index
      %c0_192 = arith.constant 0 : index
      %c4_193 = arith.constant 4 : index
      %348 = vector.load %arg7[%c1_191, %c0_192, %c4_193] : memref<2x22x22xf32, #tpu.memory_space<vmem>>, vector<1x16x16xf32>
      %349 = vector.shape_cast %348 : vector<1x16x16xf32> to vector<16x16xf32>
      %350 = vector.broadcast %347 : f32 to vector<16x16xf32>
      %351 = arith.mulf %350, %349 : vector<16x16xf32>
      %352 = arith.addf %346, %351 : vector<16x16xf32>
      %c54 = arith.constant 54 : index
      %353 = memref.load %arg2[%c54] : memref<98xf32, #tpu.memory_space<smem>>
      %c1_194 = arith.constant 1 : index
      %c0_195 = arith.constant 0 : index
      %c5_196 = arith.constant 5 : index
      %354 = vector.load %arg7[%c1_194, %c0_195, %c5_196] : memref<2x22x22xf32, #tpu.memory_space<vmem>>, vector<1x16x16xf32>
      %355 = vector.shape_cast %354 : vector<1x16x16xf32> to vector<16x16xf32>
      %356 = vector.broadcast %353 : f32 to vector<16x16xf32>
      %357 = arith.mulf %356, %355 : vector<16x16xf32>
      %358 = arith.addf %352, %357 : vector<16x16xf32>
      %c55 = arith.constant 55 : index
      %359 = memref.load %arg2[%c55] : memref<98xf32, #tpu.memory_space<smem>>
      %c1_197 = arith.constant 1 : index
      %c0_198 = arith.constant 0 : index
      %c6_199 = arith.constant 6 : index
      %360 = vector.load %arg7[%c1_197, %c0_198, %c6_199] : memref<2x22x22xf32, #tpu.memory_space<vmem>>, vector<1x16x16xf32>
      %361 = vector.shape_cast %360 : vector<1x16x16xf32> to vector<16x16xf32>
      %362 = vector.broadcast %359 : f32 to vector<16x16xf32>
      %363 = arith.mulf %362, %361 : vector<16x16xf32>
      %364 = arith.addf %358, %363 : vector<16x16xf32>
      %c56 = arith.constant 56 : index
      %365 = memref.load %arg2[%c56] : memref<98xf32, #tpu.memory_space<smem>>
      %c1_200 = arith.constant 1 : index
      %c1_201 = arith.constant 1 : index
      %c0_202 = arith.constant 0 : index
      %366 = vector.load %arg7[%c1_200, %c1_201, %c0_202] : memref<2x22x22xf32, #tpu.memory_space<vmem>>, vector<1x16x16xf32>
      %367 = vector.shape_cast %366 : vector<1x16x16xf32> to vector<16x16xf32>
      %368 = vector.broadcast %365 : f32 to vector<16x16xf32>
      %369 = arith.mulf %368, %367 : vector<16x16xf32>
      %370 = arith.addf %364, %369 : vector<16x16xf32>
      %c57 = arith.constant 57 : index
      %371 = memref.load %arg2[%c57] : memref<98xf32, #tpu.memory_space<smem>>
      %c1_203 = arith.constant 1 : index
      %c1_204 = arith.constant 1 : index
      %c1_205 = arith.constant 1 : index
      %372 = vector.load %arg7[%c1_203, %c1_204, %c1_205] : memref<2x22x22xf32, #tpu.memory_space<vmem>>, vector<1x16x16xf32>
      %373 = vector.shape_cast %372 : vector<1x16x16xf32> to vector<16x16xf32>
      %374 = vector.broadcast %371 : f32 to vector<16x16xf32>
      %375 = arith.mulf %374, %373 : vector<16x16xf32>
      %376 = arith.addf %370, %375 : vector<16x16xf32>
      %c58 = arith.constant 58 : index
      %377 = memref.load %arg2[%c58] : memref<98xf32, #tpu.memory_space<smem>>
      %c1_206 = arith.constant 1 : index
      %c1_207 = arith.constant 1 : index
      %c2_208 = arith.constant 2 : index
      %378 = vector.load %arg7[%c1_206, %c1_207, %c2_208] : memref<2x22x22xf32, #tpu.memory_space<vmem>>, vector<1x16x16xf32>
      %379 = vector.shape_cast %378 : vector<1x16x16xf32> to vector<16x16xf32>
      %380 = vector.broadcast %377 : f32 to vector<16x16xf32>
      %381 = arith.mulf %380, %379 : vector<16x16xf32>
      %382 = arith.addf %376, %381 : vector<16x16xf32>
      %c59 = arith.constant 59 : index
      %383 = memref.load %arg2[%c59] : memref<98xf32, #tpu.memory_space<smem>>
      %c1_209 = arith.constant 1 : index
      %c1_210 = arith.constant 1 : index
      %c3_211 = arith.constant 3 : index
      %384 = vector.load %arg7[%c1_209, %c1_210, %c3_211] : memref<2x22x22xf32, #tpu.memory_space<vmem>>, vector<1x16x16xf32>
      %385 = vector.shape_cast %384 : vector<1x16x16xf32> to vector<16x16xf32>
      %386 = vector.broadcast %383 : f32 to vector<16x16xf32>
      %387 = arith.mulf %386, %385 : vector<16x16xf32>
      %388 = arith.addf %382, %387 : vector<16x16xf32>
      %c60 = arith.constant 60 : index
      %389 = memref.load %arg2[%c60] : memref<98xf32, #tpu.memory_space<smem>>
      %c1_212 = arith.constant 1 : index
      %c1_213 = arith.constant 1 : index
      %c4_214 = arith.constant 4 : index
      %390 = vector.load %arg7[%c1_212, %c1_213, %c4_214] : memref<2x22x22xf32, #tpu.memory_space<vmem>>, vector<1x16x16xf32>
      %391 = vector.shape_cast %390 : vector<1x16x16xf32> to vector<16x16xf32>
      %392 = vector.broadcast %389 : f32 to vector<16x16xf32>
      %393 = arith.mulf %392, %391 : vector<16x16xf32>
      %394 = arith.addf %388, %393 : vector<16x16xf32>
      %c61 = arith.constant 61 : index
      %395 = memref.load %arg2[%c61] : memref<98xf32, #tpu.memory_space<smem>>
      %c1_215 = arith.constant 1 : index
      %c1_216 = arith.constant 1 : index
      %c5_217 = arith.constant 5 : index
      %396 = vector.load %arg7[%c1_215, %c1_216, %c5_217] : memref<2x22x22xf32, #tpu.memory_space<vmem>>, vector<1x16x16xf32>
      %397 = vector.shape_cast %396 : vector<1x16x16xf32> to vector<16x16xf32>
      %398 = vector.broadcast %395 : f32 to vector<16x16xf32>
      %399 = arith.mulf %398, %397 : vector<16x16xf32>
      %400 = arith.addf %394, %399 : vector<16x16xf32>
      %c62 = arith.constant 62 : index
      %401 = memref.load %arg2[%c62] : memref<98xf32, #tpu.memory_space<smem>>
      %c1_218 = arith.constant 1 : index
      %c1_219 = arith.constant 1 : index
      %c6_220 = arith.constant 6 : index
      %402 = vector.load %arg7[%c1_218, %c1_219, %c6_220] : memref<2x22x22xf32, #tpu.memory_space<vmem>>, vector<1x16x16xf32>
      %403 = vector.shape_cast %402 : vector<1x16x16xf32> to vector<16x16xf32>
      %404 = vector.broadcast %401 : f32 to vector<16x16xf32>
      %405 = arith.mulf %404, %403 : vector<16x16xf32>
      %406 = arith.addf %400, %405 : vector<16x16xf32>
      %c63 = arith.constant 63 : index
      %407 = memref.load %arg2[%c63] : memref<98xf32, #tpu.memory_space<smem>>
      %c1_221 = arith.constant 1 : index
      %c2_222 = arith.constant 2 : index
      %c0_223 = arith.constant 0 : index
      %408 = vector.load %arg7[%c1_221, %c2_222, %c0_223] : memref<2x22x22xf32, #tpu.memory_space<vmem>>, vector<1x16x16xf32>
      %409 = vector.shape_cast %408 : vector<1x16x16xf32> to vector<16x16xf32>
      %410 = vector.broadcast %407 : f32 to vector<16x16xf32>
      %411 = arith.mulf %410, %409 : vector<16x16xf32>
      %412 = arith.addf %406, %411 : vector<16x16xf32>
      %c64 = arith.constant 64 : index
      %413 = memref.load %arg2[%c64] : memref<98xf32, #tpu.memory_space<smem>>
      %c1_224 = arith.constant 1 : index
      %c2_225 = arith.constant 2 : index
      %c1_226 = arith.constant 1 : index
      %414 = vector.load %arg7[%c1_224, %c2_225, %c1_226] : memref<2x22x22xf32, #tpu.memory_space<vmem>>, vector<1x16x16xf32>
      %415 = vector.shape_cast %414 : vector<1x16x16xf32> to vector<16x16xf32>
      %416 = vector.broadcast %413 : f32 to vector<16x16xf32>
      %417 = arith.mulf %416, %415 : vector<16x16xf32>
      %418 = arith.addf %412, %417 : vector<16x16xf32>
      %c65 = arith.constant 65 : index
      %419 = memref.load %arg2[%c65] : memref<98xf32, #tpu.memory_space<smem>>
      %c1_227 = arith.constant 1 : index
      %c2_228 = arith.constant 2 : index
      %c2_229 = arith.constant 2 : index
      %420 = vector.load %arg7[%c1_227, %c2_228, %c2_229] : memref<2x22x22xf32, #tpu.memory_space<vmem>>, vector<1x16x16xf32>
      %421 = vector.shape_cast %420 : vector<1x16x16xf32> to vector<16x16xf32>
      %422 = vector.broadcast %419 : f32 to vector<16x16xf32>
      %423 = arith.mulf %422, %421 : vector<16x16xf32>
      %424 = arith.addf %418, %423 : vector<16x16xf32>
      %c66 = arith.constant 66 : index
      %425 = memref.load %arg2[%c66] : memref<98xf32, #tpu.memory_space<smem>>
      %c1_230 = arith.constant 1 : index
      %c2_231 = arith.constant 2 : index
      %c3_232 = arith.constant 3 : index
      %426 = vector.load %arg7[%c1_230, %c2_231, %c3_232] : memref<2x22x22xf32, #tpu.memory_space<vmem>>, vector<1x16x16xf32>
      %427 = vector.shape_cast %426 : vector<1x16x16xf32> to vector<16x16xf32>
      %428 = vector.broadcast %425 : f32 to vector<16x16xf32>
      %429 = arith.mulf %428, %427 : vector<16x16xf32>
      %430 = arith.addf %424, %429 : vector<16x16xf32>
      %c67 = arith.constant 67 : index
      %431 = memref.load %arg2[%c67] : memref<98xf32, #tpu.memory_space<smem>>
      %c1_233 = arith.constant 1 : index
      %c2_234 = arith.constant 2 : index
      %c4_235 = arith.constant 4 : index
      %432 = vector.load %arg7[%c1_233, %c2_234, %c4_235] : memref<2x22x22xf32, #tpu.memory_space<vmem>>, vector<1x16x16xf32>
      %433 = vector.shape_cast %432 : vector<1x16x16xf32> to vector<16x16xf32>
      %434 = vector.broadcast %431 : f32 to vector<16x16xf32>
      %435 = arith.mulf %434, %433 : vector<16x16xf32>
      %436 = arith.addf %430, %435 : vector<16x16xf32>
      %c68 = arith.constant 68 : index
      %437 = memref.load %arg2[%c68] : memref<98xf32, #tpu.memory_space<smem>>
      %c1_236 = arith.constant 1 : index
      %c2_237 = arith.constant 2 : index
      %c5_238 = arith.constant 5 : index
      %438 = vector.load %arg7[%c1_236, %c2_237, %c5_238] : memref<2x22x22xf32, #tpu.memory_space<vmem>>, vector<1x16x16xf32>
      %439 = vector.shape_cast %438 : vector<1x16x16xf32> to vector<16x16xf32>
      %440 = vector.broadcast %437 : f32 to vector<16x16xf32>
      %441 = arith.mulf %440, %439 : vector<16x16xf32>
      %442 = arith.addf %436, %441 : vector<16x16xf32>
      %c69 = arith.constant 69 : index
      %443 = memref.load %arg2[%c69] : memref<98xf32, #tpu.memory_space<smem>>
      %c1_239 = arith.constant 1 : index
      %c2_240 = arith.constant 2 : index
      %c6_241 = arith.constant 6 : index
      %444 = vector.load %arg7[%c1_239, %c2_240, %c6_241] : memref<2x22x22xf32, #tpu.memory_space<vmem>>, vector<1x16x16xf32>
      %445 = vector.shape_cast %444 : vector<1x16x16xf32> to vector<16x16xf32>
      %446 = vector.broadcast %443 : f32 to vector<16x16xf32>
      %447 = arith.mulf %446, %445 : vector<16x16xf32>
      %448 = arith.addf %442, %447 : vector<16x16xf32>
      %c70 = arith.constant 70 : index
      %449 = memref.load %arg2[%c70] : memref<98xf32, #tpu.memory_space<smem>>
      %c1_242 = arith.constant 1 : index
      %c3_243 = arith.constant 3 : index
      %c0_244 = arith.constant 0 : index
      %450 = vector.load %arg7[%c1_242, %c3_243, %c0_244] : memref<2x22x22xf32, #tpu.memory_space<vmem>>, vector<1x16x16xf32>
      %451 = vector.shape_cast %450 : vector<1x16x16xf32> to vector<16x16xf32>
      %452 = vector.broadcast %449 : f32 to vector<16x16xf32>
      %453 = arith.mulf %452, %451 : vector<16x16xf32>
      %454 = arith.addf %448, %453 : vector<16x16xf32>
      %c71 = arith.constant 71 : index
      %455 = memref.load %arg2[%c71] : memref<98xf32, #tpu.memory_space<smem>>
      %c1_245 = arith.constant 1 : index
      %c3_246 = arith.constant 3 : index
      %c1_247 = arith.constant 1 : index
      %456 = vector.load %arg7[%c1_245, %c3_246, %c1_247] : memref<2x22x22xf32, #tpu.memory_space<vmem>>, vector<1x16x16xf32>
      %457 = vector.shape_cast %456 : vector<1x16x16xf32> to vector<16x16xf32>
      %458 = vector.broadcast %455 : f32 to vector<16x16xf32>
      %459 = arith.mulf %458, %457 : vector<16x16xf32>
      %460 = arith.addf %454, %459 : vector<16x16xf32>
      %c72 = arith.constant 72 : index
      %461 = memref.load %arg2[%c72] : memref<98xf32, #tpu.memory_space<smem>>
      %c1_248 = arith.constant 1 : index
      %c3_249 = arith.constant 3 : index
      %c2_250 = arith.constant 2 : index
      %462 = vector.load %arg7[%c1_248, %c3_249, %c2_250] : memref<2x22x22xf32, #tpu.memory_space<vmem>>, vector<1x16x16xf32>
      %463 = vector.shape_cast %462 : vector<1x16x16xf32> to vector<16x16xf32>
      %464 = vector.broadcast %461 : f32 to vector<16x16xf32>
      %465 = arith.mulf %464, %463 : vector<16x16xf32>
      %466 = arith.addf %460, %465 : vector<16x16xf32>
      %c73 = arith.constant 73 : index
      %467 = memref.load %arg2[%c73] : memref<98xf32, #tpu.memory_space<smem>>
      %c1_251 = arith.constant 1 : index
      %c3_252 = arith.constant 3 : index
      %c3_253 = arith.constant 3 : index
      %468 = vector.load %arg7[%c1_251, %c3_252, %c3_253] : memref<2x22x22xf32, #tpu.memory_space<vmem>>, vector<1x16x16xf32>
      %469 = vector.shape_cast %468 : vector<1x16x16xf32> to vector<16x16xf32>
      %470 = vector.broadcast %467 : f32 to vector<16x16xf32>
      %471 = arith.mulf %470, %469 : vector<16x16xf32>
      %472 = arith.addf %466, %471 : vector<16x16xf32>
      %c74 = arith.constant 74 : index
      %473 = memref.load %arg2[%c74] : memref<98xf32, #tpu.memory_space<smem>>
      %c1_254 = arith.constant 1 : index
      %c3_255 = arith.constant 3 : index
      %c4_256 = arith.constant 4 : index
      %474 = vector.load %arg7[%c1_254, %c3_255, %c4_256] : memref<2x22x22xf32, #tpu.memory_space<vmem>>, vector<1x16x16xf32>
      %475 = vector.shape_cast %474 : vector<1x16x16xf32> to vector<16x16xf32>
      %476 = vector.broadcast %473 : f32 to vector<16x16xf32>
      %477 = arith.mulf %476, %475 : vector<16x16xf32>
      %478 = arith.addf %472, %477 : vector<16x16xf32>
      %c75 = arith.constant 75 : index
      %479 = memref.load %arg2[%c75] : memref<98xf32, #tpu.memory_space<smem>>
      %c1_257 = arith.constant 1 : index
      %c3_258 = arith.constant 3 : index
      %c5_259 = arith.constant 5 : index
      %480 = vector.load %arg7[%c1_257, %c3_258, %c5_259] : memref<2x22x22xf32, #tpu.memory_space<vmem>>, vector<1x16x16xf32>
      %481 = vector.shape_cast %480 : vector<1x16x16xf32> to vector<16x16xf32>
      %482 = vector.broadcast %479 : f32 to vector<16x16xf32>
      %483 = arith.mulf %482, %481 : vector<16x16xf32>
      %484 = arith.addf %478, %483 : vector<16x16xf32>
      %c76 = arith.constant 76 : index
      %485 = memref.load %arg2[%c76] : memref<98xf32, #tpu.memory_space<smem>>
      %c1_260 = arith.constant 1 : index
      %c3_261 = arith.constant 3 : index
      %c6_262 = arith.constant 6 : index
      %486 = vector.load %arg7[%c1_260, %c3_261, %c6_262] : memref<2x22x22xf32, #tpu.memory_space<vmem>>, vector<1x16x16xf32>
      %487 = vector.shape_cast %486 : vector<1x16x16xf32> to vector<16x16xf32>
      %488 = vector.broadcast %485 : f32 to vector<16x16xf32>
      %489 = arith.mulf %488, %487 : vector<16x16xf32>
      %490 = arith.addf %484, %489 : vector<16x16xf32>
      %c77 = arith.constant 77 : index
      %491 = memref.load %arg2[%c77] : memref<98xf32, #tpu.memory_space<smem>>
      %c1_263 = arith.constant 1 : index
      %c4_264 = arith.constant 4 : index
      %c0_265 = arith.constant 0 : index
      %492 = vector.load %arg7[%c1_263, %c4_264, %c0_265] : memref<2x22x22xf32, #tpu.memory_space<vmem>>, vector<1x16x16xf32>
      %493 = vector.shape_cast %492 : vector<1x16x16xf32> to vector<16x16xf32>
      %494 = vector.broadcast %491 : f32 to vector<16x16xf32>
      %495 = arith.mulf %494, %493 : vector<16x16xf32>
      %496 = arith.addf %490, %495 : vector<16x16xf32>
      %c78 = arith.constant 78 : index
      %497 = memref.load %arg2[%c78] : memref<98xf32, #tpu.memory_space<smem>>
      %c1_266 = arith.constant 1 : index
      %c4_267 = arith.constant 4 : index
      %c1_268 = arith.constant 1 : index
      %498 = vector.load %arg7[%c1_266, %c4_267, %c1_268] : memref<2x22x22xf32, #tpu.memory_space<vmem>>, vector<1x16x16xf32>
      %499 = vector.shape_cast %498 : vector<1x16x16xf32> to vector<16x16xf32>
      %500 = vector.broadcast %497 : f32 to vector<16x16xf32>
      %501 = arith.mulf %500, %499 : vector<16x16xf32>
      %502 = arith.addf %496, %501 : vector<16x16xf32>
      %c79 = arith.constant 79 : index
      %503 = memref.load %arg2[%c79] : memref<98xf32, #tpu.memory_space<smem>>
      %c1_269 = arith.constant 1 : index
      %c4_270 = arith.constant 4 : index
      %c2_271 = arith.constant 2 : index
      %504 = vector.load %arg7[%c1_269, %c4_270, %c2_271] : memref<2x22x22xf32, #tpu.memory_space<vmem>>, vector<1x16x16xf32>
      %505 = vector.shape_cast %504 : vector<1x16x16xf32> to vector<16x16xf32>
      %506 = vector.broadcast %503 : f32 to vector<16x16xf32>
      %507 = arith.mulf %506, %505 : vector<16x16xf32>
      %508 = arith.addf %502, %507 : vector<16x16xf32>
      %c80 = arith.constant 80 : index
      %509 = memref.load %arg2[%c80] : memref<98xf32, #tpu.memory_space<smem>>
      %c1_272 = arith.constant 1 : index
      %c4_273 = arith.constant 4 : index
      %c3_274 = arith.constant 3 : index
      %510 = vector.load %arg7[%c1_272, %c4_273, %c3_274] : memref<2x22x22xf32, #tpu.memory_space<vmem>>, vector<1x16x16xf32>
      %511 = vector.shape_cast %510 : vector<1x16x16xf32> to vector<16x16xf32>
      %512 = vector.broadcast %509 : f32 to vector<16x16xf32>
      %513 = arith.mulf %512, %511 : vector<16x16xf32>
      %514 = arith.addf %508, %513 : vector<16x16xf32>
      %c81 = arith.constant 81 : index
      %515 = memref.load %arg2[%c81] : memref<98xf32, #tpu.memory_space<smem>>
      %c1_275 = arith.constant 1 : index
      %c4_276 = arith.constant 4 : index
      %c4_277 = arith.constant 4 : index
      %516 = vector.load %arg7[%c1_275, %c4_276, %c4_277] : memref<2x22x22xf32, #tpu.memory_space<vmem>>, vector<1x16x16xf32>
      %517 = vector.shape_cast %516 : vector<1x16x16xf32> to vector<16x16xf32>
      %518 = vector.broadcast %515 : f32 to vector<16x16xf32>
      %519 = arith.mulf %518, %517 : vector<16x16xf32>
      %520 = arith.addf %514, %519 : vector<16x16xf32>
      %c82 = arith.constant 82 : index
      %521 = memref.load %arg2[%c82] : memref<98xf32, #tpu.memory_space<smem>>
      %c1_278 = arith.constant 1 : index
      %c4_279 = arith.constant 4 : index
      %c5_280 = arith.constant 5 : index
      %522 = vector.load %arg7[%c1_278, %c4_279, %c5_280] : memref<2x22x22xf32, #tpu.memory_space<vmem>>, vector<1x16x16xf32>
      %523 = vector.shape_cast %522 : vector<1x16x16xf32> to vector<16x16xf32>
      %524 = vector.broadcast %521 : f32 to vector<16x16xf32>
      %525 = arith.mulf %524, %523 : vector<16x16xf32>
      %526 = arith.addf %520, %525 : vector<16x16xf32>
      %c83 = arith.constant 83 : index
      %527 = memref.load %arg2[%c83] : memref<98xf32, #tpu.memory_space<smem>>
      %c1_281 = arith.constant 1 : index
      %c4_282 = arith.constant 4 : index
      %c6_283 = arith.constant 6 : index
      %528 = vector.load %arg7[%c1_281, %c4_282, %c6_283] : memref<2x22x22xf32, #tpu.memory_space<vmem>>, vector<1x16x16xf32>
      %529 = vector.shape_cast %528 : vector<1x16x16xf32> to vector<16x16xf32>
      %530 = vector.broadcast %527 : f32 to vector<16x16xf32>
      %531 = arith.mulf %530, %529 : vector<16x16xf32>
      %532 = arith.addf %526, %531 : vector<16x16xf32>
      %c84 = arith.constant 84 : index
      %533 = memref.load %arg2[%c84] : memref<98xf32, #tpu.memory_space<smem>>
      %c1_284 = arith.constant 1 : index
      %c5_285 = arith.constant 5 : index
      %c0_286 = arith.constant 0 : index
      %534 = vector.load %arg7[%c1_284, %c5_285, %c0_286] : memref<2x22x22xf32, #tpu.memory_space<vmem>>, vector<1x16x16xf32>
      %535 = vector.shape_cast %534 : vector<1x16x16xf32> to vector<16x16xf32>
      %536 = vector.broadcast %533 : f32 to vector<16x16xf32>
      %537 = arith.mulf %536, %535 : vector<16x16xf32>
      %538 = arith.addf %532, %537 : vector<16x16xf32>
      %c85 = arith.constant 85 : index
      %539 = memref.load %arg2[%c85] : memref<98xf32, #tpu.memory_space<smem>>
      %c1_287 = arith.constant 1 : index
      %c5_288 = arith.constant 5 : index
      %c1_289 = arith.constant 1 : index
      %540 = vector.load %arg7[%c1_287, %c5_288, %c1_289] : memref<2x22x22xf32, #tpu.memory_space<vmem>>, vector<1x16x16xf32>
      %541 = vector.shape_cast %540 : vector<1x16x16xf32> to vector<16x16xf32>
      %542 = vector.broadcast %539 : f32 to vector<16x16xf32>
      %543 = arith.mulf %542, %541 : vector<16x16xf32>
      %544 = arith.addf %538, %543 : vector<16x16xf32>
      %c86 = arith.constant 86 : index
      %545 = memref.load %arg2[%c86] : memref<98xf32, #tpu.memory_space<smem>>
      %c1_290 = arith.constant 1 : index
      %c5_291 = arith.constant 5 : index
      %c2_292 = arith.constant 2 : index
      %546 = vector.load %arg7[%c1_290, %c5_291, %c2_292] : memref<2x22x22xf32, #tpu.memory_space<vmem>>, vector<1x16x16xf32>
      %547 = vector.shape_cast %546 : vector<1x16x16xf32> to vector<16x16xf32>
      %548 = vector.broadcast %545 : f32 to vector<16x16xf32>
      %549 = arith.mulf %548, %547 : vector<16x16xf32>
      %550 = arith.addf %544, %549 : vector<16x16xf32>
      %c87 = arith.constant 87 : index
      %551 = memref.load %arg2[%c87] : memref<98xf32, #tpu.memory_space<smem>>
      %c1_293 = arith.constant 1 : index
      %c5_294 = arith.constant 5 : index
      %c3_295 = arith.constant 3 : index
      %552 = vector.load %arg7[%c1_293, %c5_294, %c3_295] : memref<2x22x22xf32, #tpu.memory_space<vmem>>, vector<1x16x16xf32>
      %553 = vector.shape_cast %552 : vector<1x16x16xf32> to vector<16x16xf32>
      %554 = vector.broadcast %551 : f32 to vector<16x16xf32>
      %555 = arith.mulf %554, %553 : vector<16x16xf32>
      %556 = arith.addf %550, %555 : vector<16x16xf32>
      %c88 = arith.constant 88 : index
      %557 = memref.load %arg2[%c88] : memref<98xf32, #tpu.memory_space<smem>>
      %c1_296 = arith.constant 1 : index
      %c5_297 = arith.constant 5 : index
      %c4_298 = arith.constant 4 : index
      %558 = vector.load %arg7[%c1_296, %c5_297, %c4_298] : memref<2x22x22xf32, #tpu.memory_space<vmem>>, vector<1x16x16xf32>
      %559 = vector.shape_cast %558 : vector<1x16x16xf32> to vector<16x16xf32>
      %560 = vector.broadcast %557 : f32 to vector<16x16xf32>
      %561 = arith.mulf %560, %559 : vector<16x16xf32>
      %562 = arith.addf %556, %561 : vector<16x16xf32>
      %c89 = arith.constant 89 : index
      %563 = memref.load %arg2[%c89] : memref<98xf32, #tpu.memory_space<smem>>
      %c1_299 = arith.constant 1 : index
      %c5_300 = arith.constant 5 : index
      %c5_301 = arith.constant 5 : index
      %564 = vector.load %arg7[%c1_299, %c5_300, %c5_301] : memref<2x22x22xf32, #tpu.memory_space<vmem>>, vector<1x16x16xf32>
      %565 = vector.shape_cast %564 : vector<1x16x16xf32> to vector<16x16xf32>
      %566 = vector.broadcast %563 : f32 to vector<16x16xf32>
      %567 = arith.mulf %566, %565 : vector<16x16xf32>
      %568 = arith.addf %562, %567 : vector<16x16xf32>
      %c90 = arith.constant 90 : index
      %569 = memref.load %arg2[%c90] : memref<98xf32, #tpu.memory_space<smem>>
      %c1_302 = arith.constant 1 : index
      %c5_303 = arith.constant 5 : index
      %c6_304 = arith.constant 6 : index
      %570 = vector.load %arg7[%c1_302, %c5_303, %c6_304] : memref<2x22x22xf32, #tpu.memory_space<vmem>>, vector<1x16x16xf32>
      %571 = vector.shape_cast %570 : vector<1x16x16xf32> to vector<16x16xf32>
      %572 = vector.broadcast %569 : f32 to vector<16x16xf32>
      %573 = arith.mulf %572, %571 : vector<16x16xf32>
      %574 = arith.addf %568, %573 : vector<16x16xf32>
      %c91 = arith.constant 91 : index
      %575 = memref.load %arg2[%c91] : memref<98xf32, #tpu.memory_space<smem>>
      %c1_305 = arith.constant 1 : index
      %c6_306 = arith.constant 6 : index
      %c0_307 = arith.constant 0 : index
      %576 = vector.load %arg7[%c1_305, %c6_306, %c0_307] : memref<2x22x22xf32, #tpu.memory_space<vmem>>, vector<1x16x16xf32>
      %577 = vector.shape_cast %576 : vector<1x16x16xf32> to vector<16x16xf32>
      %578 = vector.broadcast %575 : f32 to vector<16x16xf32>
      %579 = arith.mulf %578, %577 : vector<16x16xf32>
      %580 = arith.addf %574, %579 : vector<16x16xf32>
      %c92 = arith.constant 92 : index
      %581 = memref.load %arg2[%c92] : memref<98xf32, #tpu.memory_space<smem>>
      %c1_308 = arith.constant 1 : index
      %c6_309 = arith.constant 6 : index
      %c1_310 = arith.constant 1 : index
      %582 = vector.load %arg7[%c1_308, %c6_309, %c1_310] : memref<2x22x22xf32, #tpu.memory_space<vmem>>, vector<1x16x16xf32>
      %583 = vector.shape_cast %582 : vector<1x16x16xf32> to vector<16x16xf32>
      %584 = vector.broadcast %581 : f32 to vector<16x16xf32>
      %585 = arith.mulf %584, %583 : vector<16x16xf32>
      %586 = arith.addf %580, %585 : vector<16x16xf32>
      %c93 = arith.constant 93 : index
      %587 = memref.load %arg2[%c93] : memref<98xf32, #tpu.memory_space<smem>>
      %c1_311 = arith.constant 1 : index
      %c6_312 = arith.constant 6 : index
      %c2_313 = arith.constant 2 : index
      %588 = vector.load %arg7[%c1_311, %c6_312, %c2_313] : memref<2x22x22xf32, #tpu.memory_space<vmem>>, vector<1x16x16xf32>
      %589 = vector.shape_cast %588 : vector<1x16x16xf32> to vector<16x16xf32>
      %590 = vector.broadcast %587 : f32 to vector<16x16xf32>
      %591 = arith.mulf %590, %589 : vector<16x16xf32>
      %592 = arith.addf %586, %591 : vector<16x16xf32>
      %c94 = arith.constant 94 : index
      %593 = memref.load %arg2[%c94] : memref<98xf32, #tpu.memory_space<smem>>
      %c1_314 = arith.constant 1 : index
      %c6_315 = arith.constant 6 : index
      %c3_316 = arith.constant 3 : index
      %594 = vector.load %arg7[%c1_314, %c6_315, %c3_316] : memref<2x22x22xf32, #tpu.memory_space<vmem>>, vector<1x16x16xf32>
      %595 = vector.shape_cast %594 : vector<1x16x16xf32> to vector<16x16xf32>
      %596 = vector.broadcast %593 : f32 to vector<16x16xf32>
      %597 = arith.mulf %596, %595 : vector<16x16xf32>
      %598 = arith.addf %592, %597 : vector<16x16xf32>
      %c95 = arith.constant 95 : index
      %599 = memref.load %arg2[%c95] : memref<98xf32, #tpu.memory_space<smem>>
      %c1_317 = arith.constant 1 : index
      %c6_318 = arith.constant 6 : index
      %c4_319 = arith.constant 4 : index
      %600 = vector.load %arg7[%c1_317, %c6_318, %c4_319] : memref<2x22x22xf32, #tpu.memory_space<vmem>>, vector<1x16x16xf32>
      %601 = vector.shape_cast %600 : vector<1x16x16xf32> to vector<16x16xf32>
      %602 = vector.broadcast %599 : f32 to vector<16x16xf32>
      %603 = arith.mulf %602, %601 : vector<16x16xf32>
      %604 = arith.addf %598, %603 : vector<16x16xf32>
      %c96 = arith.constant 96 : index
      %605 = memref.load %arg2[%c96] : memref<98xf32, #tpu.memory_space<smem>>
      %c1_320 = arith.constant 1 : index
      %c6_321 = arith.constant 6 : index
      %c5_322 = arith.constant 5 : index
      %606 = vector.load %arg7[%c1_320, %c6_321, %c5_322] : memref<2x22x22xf32, #tpu.memory_space<vmem>>, vector<1x16x16xf32>
      %607 = vector.shape_cast %606 : vector<1x16x16xf32> to vector<16x16xf32>
      %608 = vector.broadcast %605 : f32 to vector<16x16xf32>
      %609 = arith.mulf %608, %607 : vector<16x16xf32>
      %610 = arith.addf %604, %609 : vector<16x16xf32>
      %c97 = arith.constant 97 : index
      %611 = memref.load %arg2[%c97] : memref<98xf32, #tpu.memory_space<smem>>
      %c1_323 = arith.constant 1 : index
      %c6_324 = arith.constant 6 : index
      %c6_325 = arith.constant 6 : index
      %612 = vector.load %arg7[%c1_323, %c6_324, %c6_325] : memref<2x22x22xf32, #tpu.memory_space<vmem>>, vector<1x16x16xf32>
      %613 = vector.shape_cast %612 : vector<1x16x16xf32> to vector<16x16xf32>
      %614 = vector.broadcast %611 : f32 to vector<16x16xf32>
      %615 = arith.mulf %614, %613 : vector<16x16xf32>
      %616 = arith.addf %610, %615 : vector<16x16xf32>
      %cst_326 = arith.constant 0.000000e+00 : f32
      %617 = vector.broadcast %cst_326 : f32 to vector<16x16xf32>
      %618 = arith.subf %617, %616 : vector<16x16xf32>
      %619 = math.exp %618 : vector<16x16xf32>
      %cst_327 = arith.constant 1.000000e+00 : f32
      %620 = vector.broadcast %cst_327 : f32 to vector<16x16xf32>
      %621 = arith.addf %620, %619 : vector<16x16xf32>
      %622 = tpu.reciprocal %621 : vector<16x16xf32> -> vector<16x16xf32>
      %c0_328 = arith.constant 0 : index
      %c0_329 = arith.constant 0 : index
      %c0_330 = arith.constant 0 : index
      %c0_331 = arith.constant 0 : index
      %623 = vector.load %arg4[%c0_328, %c0_329, %c0_330, %c0_331] : memref<1x1x16x16xf32, #tpu.memory_space<vmem>>, vector<1x1x16x16xf32>
      %624 = vector.shape_cast %623 : vector<1x1x16x16xf32> to vector<16x16xf32>
      %625 = vector.shape_cast %622 : vector<16x16xf32> to vector<1x1x16x16xf32>
      tpu.vector_store %arg4[%c0_328, %c0_329, %c0_330, %c0_331], %625 {strides = array<i32>} : memref<1x1x16x16xf32, #tpu.memory_space<vmem>>, vector<1x1x16x16xf32>,
    } else {
    }
    return
  }
  func.func @transform_0(%arg0: i32, %arg1: i32) -> i32 {
    %c0_i32 = arith.constant 0 : i32
    %c0_i32_0 = arith.constant 0 : i32
    return %c0_i32 : i32
  }
  func.func @transform_1(%arg0: i32, %arg1: i32) -> (i32, i32, i32, i32) {
    %c0_i32 = arith.constant 0 : i32
    %c0_i32_0 = arith.constant 0 : i32
    %c0_i32_1 = arith.constant 0 : i32
    return %arg0, %arg1, %c0_i32, %c0_i32_0 : i32, i32, i32, i32
  }
  func.func @transform_2(%arg0: i32, %arg1: i32) -> (i32, i32, i32, i32) {
    %c0_i32 = arith.constant 0 : i32
    %c0_i32_0 = arith.constant 0 : i32
    %c0_i32_1 = arith.constant 0 : i32
    %c0_i32_2 = arith.constant 0 : i32
    return %arg0, %c0_i32, %c0_i32_0, %c0_i32_1 : i32, i32, i32, i32
  }
}

</mosaic_0001>

<bundles_post_ra>
// kernel: tpu_custom_call.1
= control target key start
LH: loop header
LB: loop body
LE: loop exit
PB: predicated region body
PF: predicated region fallthrough
CT: control target
= control target key end

     0   :  { %7 = vsyncpa [#allocation8], 0  ;;  %s2911_s0 = inlined_call_operand.hbm [shape: f32[98], index: 0, kind: input, shape index: {}]   ;;  %s2912_s1 = inlined_call_operand.hbm [shape: f32[2,4,16,16], index: 1, kind: input, shape index: {}]   ;;  %s2913_s2 = inlined_call_operand.hbm [shape: f32[2,1,16,16], index: 2, kind: output, shape index: {}]  }
   0x1   :  { %8 = vsyncpa [#allocation6], 0 }
   0x2   :  { %10 = vsyncpa [#allocation6 + $0x1], 0 }
   0x3   :  { %11 = vsyncpa [#allocation7], 0 }
   0x4   :  { %13 = vsyncpa [#allocation7 + $0x1], 0  ;;  %s2071_s9 = smov 0   ;;  %s2073_s10 = smov 0  }
   0x5   :  { %s2075_s11 = smov 0   ;;  %s2077_s12 = smov 0  }
   0x6   :  { %s2079_s13 = smov 0   ;;  %s2081_s14 = smov 0  }
   0x7 LB: > { %s1699_s15 = sadd.s32 4294967295, %s2038_s14   ;;  %s1700_s16 = sadd.s32 4294967294, %s2038_s14   ;;  %s2038_s14 = sphi %s2081_s14, %s19_s14   ;;  %s2034_s13 = sphi %s2079_s13, %s2933_s13   ;;  %s2030_s12 = sphi %s2077_s12, %s2932_s12   ;;  %s2026_s11 = sphi %s2075_s11, %s2931_s11   ;;  %s2022_s10 = sphi %s2073_s10, %s2930_s10   ;;  %s2018_s9 = sphi %s2071_s9, %s2929_s9  }
   0x8   : > { %s61_s17 = sadd.s32 1, %s2026_s11  ;;  %p68_p0 = scmp.ne.s32.totalorder %s2026_s11, %s2022_s10 }
   0x9   : > { %p69_p1 = scmp.eq.s32.totalorder %s2038_s14, 0  ;;  %p74_p2 = scmp.ne.s32.totalorder %s2022_s10, %s2018_s9 }
   0xa   : > { %p2109_p3 = scmp.eq.s32.totalorder %s1699_s15, 0  ;;  %p98_p4 = scmp.eq.s32.totalorder %s1699_s15, 1 }
   0xb   : > { %p70_p5 = por %p69_p1, %p68_p0  ;;  %p104_p6 = scmp.eq.s32.totalorder %s1700_s16, 1 }
   0xc   : > { %s2918_s18 = scalar_select %p2109_p3, 1, 0 }
   0xd   : > { %p2115_p7 = por %p2109_p3, %p74_p2  ;;  %p2119_p8 = por %p98_p4, %p68_p0 }
   0xe   : > { %p2123_p9 = por %p104_p6, %p74_p2  ;;  %p1701_p10 = scmp.ge.s32.totalorder %s2038_s14, 1 }
   0xf   : > { %s2919_s19 = scalar_select %p2115_p7, 1, 0 }
  0x10   : > { %s2920_s20 = scalar_select %p2119_p8, 1, 0 }
  0x11   : > { %s2921_s21 = scalar_select %p2123_p9, 1, 0 }
  0x12   : > { %p111_p11 = scmp.lt.s32.totalorder %s2038_s14, 3  ;;  %p1836_p1 = scmp.lt.s32.totalorder %s2038_s14, 2 }
  0x13   : > { %s133_s23 = sand.u32 1, %s2026_s11   ;;  %s31_s25 = sadd.s32 1, %s2034_s13 }
  0x14   : > { %p2130_p13 = pnand %p1701_p10, %p111_p11  ;;  %p2138_p0 = pnand %p1836_p1, %p70_p5 }
  0x15   : > { %s1704_s26 = sshll.u32 %s133_s23, 6  ;;  %p33_p4 = scmp.ge.s32.totalorder %s31_s25, 2 }
  0x16   : > { %p1823_p7 = pneg %p2130_p13  ;;  %s1909_s29 = scalar_lea.hbm %s2911_s0, 16 }
  0x17   : > { %p1910_p6 = scmp.ne.s32.totalorder %s2911_s0, %s1909_s29  ;;  %p1916_p5 = scmp.lt.u32.totalorder %s1909_s29, %s2911_s0 }
  0x18   : > { %p1824_p2 = pnand %p1823_p7, %p2109_p3 }
  0x1a   : > { %p1911_p10 = pneg %p1824_p2 }
  0x1c   : > { %p1912_p11 = pnand %p1911_p10, %p1910_p6 }
  0x1e   : > { %p1913_p12 = pneg %p1912_p11 }
  0x20   : > { %p1918_p1 = pnand %p1916_p5, %p1913_p12 }
  0x22   : > { %1921 = shalt.err (!%p1918_p1)
}
  0x23   : > { %s2040_s6 = smov [#allocation5]   ;;  %s2935_s25 = smov (%p33_p4, %s31_s25), 0 }
  0x24   : > { %1826 = dma.hbm_to_smem (!%p1824_p2), %s2911_s0, 16, %s2040_s6, [#allocation8]  }
  0x25   : > { %s1813_s15 = sshll.u32 %s2034_s13, 10  ;;  %s56_s16 = ssub.s32 %s2034_s13, %s2935_s25 }
  0x26   : > { %s2165_s29 = scalar_lea.hbm %s2912_s1, %s1813_s15  ;;  %p59_p7 = scmp.eq.s32.totalorder %s56_s16, 0 }
  0x27   : > { %s137_s30 = scalar_lea.vmem [#allocation9], %s1704_s26  ;;  %s2174_s5 = scalar_lea.sflag [#allocation6], %s133_s23 }
  0x28   : > { %s147_s3 = sshll.u32 %s137_s30, 4  ;;  %s1922_s6 = scalar_lea.hbm %s2165_s29, 1024  ;;  %s2167_s3 = int_to_ptr.vmem [resolvable:$true] %s147_s3 }
  0x29   : > { %s2172_s4 = scalar_select %p59_p7, %s2026_s11, %s61_s17  }
  0x2a   : > { %p1923_p12 = scmp.ne.s32.totalorder %s2165_s29, %s1922_s6  ;;  %p1924_p2 = pneg %p2138_p0 }
  0x2b   : > { %s1927_s26 = scalar_lea.hbm %s2912_s1, 2048  ;;  %p1928_p10 = scmp.lt.u32.totalorder %s2165_s29, %s2912_s1 }
  0x2c   : > { %p1925_p4 = pnand %p1924_p2, %p1923_p12  ;;  %p1929_p11 = scmp.lt.u32.totalorder %s1927_s26, %s1922_s6 }
  0x2d   : > { %p1931_p1 = scmp.lt.u32.totalorder %s1922_s6, %s2165_s29 }
  0x2e   : > { %p1926_p6 = pneg %p1925_p4  ;;  %p1930_p5 = por %p1929_p11, %p1928_p10 }
  0x30   : > { %p1932_p7 = por %p1931_p1, %p1930_p5 }
  0x32   : > { %p1933_p9 = pnand %p1932_p7, %p1926_p6 }
  0x34   : > { %1936 = shalt.err (!%p1933_p9)
}
  0x35   : > { %s1937_s17 = scalar_lea.vmem %s2167_s3, 1024  ;;  %s2041_s23 = smov [#allocation9]  }
  0x36   : > { %p1938_p12 = scmp.ne.s32.totalorder %s2167_s3, %s1937_s17  ;;  %s1942_s27 = sshll.u32 %s2041_s23, 4  ;;  %s1943_s27 = int_to_ptr.vmem [resolvable:$false] %s1942_s27 }
  0x37   : > { %s1944_s28 = scalar_lea.vmem %s1943_s27, 2048  ;;  %p1945_p3 = scmp.lt.s32.totalorder %s2167_s3, %s1943_s27 }
  0x38   : > { %p1940_p4 = pnand %p1938_p12, %p1924_p2  ;;  %p1946_p10 = scmp.lt.s32.totalorder %s1944_s28, %s1937_s17 }
  0x3a   : > { %p1941_p8 = pneg %p1940_p4  ;;  %p1947_p11 = por %p1946_p10, %p1945_p3 }
  0x3c   : > { %p1948_p5 = pnand %p1947_p11, %p1941_p8 }
  0x3e   : > { %1951 = shalt.err (!%p1948_p5)
}
  0x3f   : > { %s2042_s30 = smov 128   ;;  %s2043_s6 = smov 8  }
  0x40   : > { %1830 = dma.hbm_to_vmem [thread:$0]  (!%p2138_p0), %s2165_s29, 1024, %s2167_s3, %s2174_s5, %s2042_s30, %s2042_s30, %s2043_s6  }
  0x41   : > { %159 = sbr.rel (%p2130_p13) target bundleno = 721 (0x2d1), region = 28  ;;  %p2924_p9 = scmp.ne.s32.totalorder (!%p2130_p13), %s2918_s18, 0 }
  0x48   : > { %2005 = dma.done.wait (%p2924_p9), [#allocation8], 16  }
  0x49   : > { %2007 = vsyncadd (%p2924_p9), [#allocation8], 4294967280  ;;  %s2209_s7 = sand.u32 1, %s2022_s10   ;;  %p2925_p3 = scmp.ne.s32.totalorder %s2919_s19, 0 }
  0x4a   : > { %s1709_s8 = sshll.u32 %s2209_s7, 6  ;;  %s166_s26 = scalar_lea.sflag [#allocation6], %s2209_s7 }
  0x4b   : > { %s169_s15 = scalar_lea.vmem [#allocation9], %s1709_s8 }
  0x4c   : > { %2009 = dma.done.wait (%p2925_p3), %s166_s26, 1024  }
  0x4d   : > { %2011 = vsyncadd (%p2925_p3), %s166_s26, 4294966272 }
  0x4e   : > { %174 = sfence }
  0x4f   : > { %vm196_vm0 = vcmask 130048   ;;  %v201_v0 = vld [vmem:[%s169_s15] sm:$0xff]  ;;  %v203_v1 = vld [vmem:[%s169_s15 + $0x10] sm:$0xff]  ;;  %v2044_v3 = vmov 0.0   ;;  %v202_v8 = vld [vmem:[%s169_s15 + $0x8] sm:$0xff]  ;;  %vm259_vm1 = vcmask 179200  }
  0x50   : > { %v205_v2 = vld [vmem:[%s169_s15 + $0x20] sm:$0xff]  ;;  %197 = vst.msk [vmem:[#allocation2] sm:$0xff] %vm196_vm0, %v2044_v3  ;;  %v207_v4 = vld [vmem:[%s169_s15 + $0x30] sm:$0xff]  ;;  %v212_v5 = vsel %vm196_vm0, %v201_v0, 0.0  ;;  %v213_v6 = vsel %vm196_vm0, %v203_v1, 0.0  ;;  %198 = vst.msk [vmem:[#allocation2 + $0x8] sm:$0xff] %vm196_vm0, %v2044_v3 }
  0x51   : > { %v215_v7 = vsel %vm196_vm0, %v205_v2, 0.0  ;;  %v204_v9 = vld [vmem:[%s169_s15 + $0x18] sm:$0xff]  ;;  %v214_v10 = vadd.f32 %v213_v6, %v212_v5  ;;  %v206_v11 = vld [vmem:[%s169_s15 + $0x28] sm:$0xff]  ;;  %v219_v13 = vsel %vm196_vm0, %v202_v8, 0.0  ;;  %v217_v15 = vsel %vm196_vm0, %v207_v4, 0.0  ;;  %260 = vst.msk [vmem:[#allocation4] sm:$0xff] %vm259_vm1, %v2044_v3 }
  0x52   : > { %v208_v12 = vld [vmem:[%s169_s15 + $0x38] sm:$0xff]  ;;  %v220_v14 = vsel %vm196_vm0, %v204_v9, 0.0  ;;  %v222_v17 = vsel %vm196_vm0, %v206_v11, 0.0  ;;  %261 = vst.msk [vmem:[#allocation4 + $0x8] sm:$0xff] %vm259_vm1, %v2044_v3  ;;  %264 = vst.msk [vmem:[#allocation4 + $0x18] sm:$0xff] %vm259_vm1, %v2044_v3  ;;  %v2045_v21 = vmov -inf  }
  0x53   : > { %v221_v16 = vadd.f32 %v220_v14, %v219_v13  ;;  %v216_v18 = vadd.f32 %v215_v7, %v214_v10  ;;  %v224_v19 = vsel %vm196_vm0, %v208_v12, 0.0  ;;  %265 = vst.msk [vmem:[#allocation4 + $0x20] sm:$0xff] %vm259_vm1, %v2044_v3  ;;  %v232_v22 = vsel %vm196_vm0, %v201_v0, -inf  ;;  %s2046_s18 = smov 3   ;;  %s1711_s19 = sld [smem:[#allocation5 + $0x1]] }
  0x54   : > { %199 = vst.msk [vmem:[#allocation3] sm:$0xff] %vm196_vm0, %v2045_v21  ;;  %v233_v23 = vsel %vm196_vm0, %v203_v1, -inf  ;;  %v234_v24 = vsel %vm196_vm0, %v205_v2, -inf  ;;  %200 = vst.msk [vmem:[#allocation3 + $0x8] sm:$0xff] %vm196_vm0, %v2045_v21  ;;  %v236_v27 = vsel %vm196_vm0, %v207_v4, -inf  ;;  %v239_v28 = vsel %vm196_vm0, %v202_v8, -inf }
  0x55   : > { %v223_v20 = vadd.f32 %v222_v17, %v221_v16  ;;  %v218_v25 = vadd.f32 %v217_v15, %v216_v18  ;;  %v235_v26 = vmax.f32 %v232_v22, %v234_v24  ;;  %v237_v30 = vmax.f32 %v233_v23, %v236_v27  ;;  %s1712_s22 = sld [smem:[#allocation5 + $0x2]]  ;;  %s1713_s24 = sld [smem:[#allocation5 + $0x3]] }
  0x56   : > { %v240_v31 = vsel %vm196_vm0, %v204_v9, -inf  ;;  %v241_v32 = vsel %vm196_vm0, %v206_v11, -inf  ;;  %v243_v36 = vsel %vm196_vm0, %v208_v12, -inf  ;;  %vm262_vm2 = vcmask 177152   ;;  %s1714_s29 = sld [smem:[#allocation5 + $0x4]]  ;;  %s2047_s3 = smov 127  }
  0x57   : > { %v225_v29 = vadd.f32 %v224_v19, %v223_v20  ;;  %v209_v33 = vld [vmem:[#allocation2] sm:$0xff]  ;;  %v210_v34 = vld [vmem:[#allocation2 + $0x8] sm:$0xff]  ;;  %v242_v35 = vmax.f32 %v239_v28, %v241_v32  ;;  %v238_v39 = vmax.f32 %v235_v26, %v237_v30  ;;  %v244_v40 = vmax.f32 %v240_v31, %v243_v36  ;;  %263 = vst.msk [vmem:[#allocation4 + $0x10] sm:$0x3f] %vm262_vm2, %v2044_v3  ;;  %s1715_s5 = sld [smem:[#allocation5 + $0x5]]  ;;  %s2048_s16 = smov 126  }
  0x58   : > { %v226_v37 = vadd.f32 %v218_v25, %v209_v33  ;;  %266 = vst.msk [vmem:[#allocation4 + $0x28] sm:$0x3f] %vm262_vm2, %v2044_v3  ;;  %vm275_vm3 = vcmask 154648   ;;  %s1716_s17 = sld [smem:[#allocation5 + $0x6]]  ;;  %s2049_s23 = smov 125  }
  0x59   : > { %v227_v38 = vadd.f32 %v225_v29, %v210_v34  ;;  %v245_v43 = vmax.f32 %v242_v35, %v244_v40  ;;  %v298_v55 = vstv %s1711_s19  ;;  %s1718_s27 = sld [smem:[#allocation5 + $0x8]]  ;;  %s2050_s28 = smov 124  }
  0x5a   : > { %228 = vst.msk [vmem:[#allocation2] sm:$0xff] %vm196_vm0, %v226_v37  ;;  %s1719_s30 = sld [smem:[#allocation5 + $0x9]]  ;;  %s2051_s6 = smov 123  }
  0x5b   : > { %229 = vst.msk [vmem:[#allocation2 + $0x8] sm:$0xff] %vm196_vm0, %v227_v38  ;;  %v230_v41 = vld [vmem:[#allocation3] sm:$0xff]  ;;  %v231_v42 = vld [vmem:[#allocation3 + $0x8] sm:$0xff]  ;;  %v312_v59 = vstv %s1712_s22  ;;  %v326_v63 = vstv %s1713_s24  ;;  %s1720_s8 = sld [smem:[#allocation5 + $0xa]]  ;;  %s2052_s26 = smov 122  }
  0x5c   : > { %v246_v44 = vmax.f32 %v230_v41, %v238_v39  ;;  %v247_v45 = vmax.f32 %v231_v42, %v245_v43  ;;  %v340_v2 = vstv %s1714_s29  ;;  %s1721_s15 = sld [smem:[#allocation5 + $0xb]]  ;;  %s1723_s19 = sld [smem:[#allocation5 + $0xd]] }
  0x5d   : > { %v354_v5 = vstv %s1715_s5  ;;  %s1725_s22 = sld [smem:[#allocation5 + $0xf]]  ;;  %s1726_s24 = sld [smem:[#allocation5 + $0x10]] }
  0x5e   : > { %248 = vst.msk [vmem:[#allocation3] sm:$0xff] %vm196_vm0, %v246_v44  ;;  %249 = vst.msk [vmem:[#allocation3 + $0x8] sm:$0xff] %vm196_vm0, %v247_v45  ;;  %v368_v8 = vstv %s1716_s17  ;;  %s1727_s29 = sld [smem:[#allocation5 + $0x11]]  ;;  %s1728_s5 = sld [smem:[#allocation5 + $0x12]] }
  0x5f   : > { %v390_v12 = vstv %s1718_s27  ;;  %s1729_s17 = sld [smem:[#allocation5 + $0x13]]  ;;  %s1730_s27 = sld [smem:[#allocation5 + $0x14]] }
  0x60   : > { %v404_v16 = vstv %s1719_s30  ;;  %s1732_s30 = sld [smem:[#allocation5 + $0x16]]  ;;  %p2926_p13 = scmp.ne.s32.totalorder %s2920_s20, 0 }
  0x61   : > { %v253_v46 = vld [vmem:[#allocation2] sm:$0xff]  ;;  %v418_v19 = vstv %s1720_s8  ;;  %s1733_s8 = sld [smem:[#allocation5 + $0x17]] }
  0x62   : > { %v254_v47 = vld [vmem:[#allocation2 + $0x8] sm:$0xff]  ;;  %v255_v48 = vmul.f32 0.25, %v253_v46  ;;  %v432_v22 = vstv %s1721_s15  ;;  %v460_v28 = vstv %s1723_s19  ;;  %s1734_s15 = sld [smem:[#allocation5 + $0x18]]  ;;  %s1736_s19 = sld [smem:[#allocation5 + $0x1a]] }
  0x63   : > { %v256_v49 = vmul.f32 0.25, %v254_v47  ;;  %v482_v32 = vstv %s1725_s22  ;;  %v496_v36 = vstv %s1726_s24  ;;  %s1737_s22 = sld [smem:[#allocation5 + $0x1b]]  ;;  %s1739_s24 = sld [smem:[#allocation5 + $0x1d]] }
  0x64   : > { %269 = vrot.lane.b32.xlu0 %v255_v48, %s2046_s18  ;;  %v510_v39 = vstv %s1727_s29  ;;  %v524_v42 = vstv %s1728_s5  ;;  %s1740_s29 = sld [smem:[#allocation5 + $0x1e]]  ;;  %s1741_s5 = sld [smem:[#allocation5 + $0x1f]] }
  0x65   : > { %v257_v50 = vld [vmem:[#allocation3] sm:$0xff]  ;;  %v258_v51 = vld [vmem:[#allocation3 + $0x8] sm:$0xff]  ;;  %v538_v45 = vstv %s1729_s17  ;;  %v552_v48 = vstv %s1730_s27  ;;  %s1742_s17 = sld [smem:[#allocation5 + $0x20]]  ;;  %s1743_s27 = sld [smem:[#allocation5 + $0x21]] }
  0x66   : > { %280 = vrot.lane.b32.xlu1 %v257_v50, %s2046_s18 }
  0x68   : > { %271 = vrot.lane.b32.xlu0 %v256_v49, %s2046_s18 }
  0x6a   : > { %282 = vrot.lane.b32.xlu1 %v258_v51, %s2046_s18  ;;  %s1722_s18 = sld [smem:[#allocation5 + $0xc]] }
  0x70   : > { %v446_v25 = vstv %s1722_s18  ;;  %s1735_s18 = sld [smem:[#allocation5 + $0x19]] }
  0xd6   : > { %v270_v52 = vpop.permute.xlu0 %269 }
  0xd7   : > { %276 = vst.msk [vmem:[#allocation4 + $0x3] sm:$0xff] %vm275_vm3, %v270_v52  ;;  %v574_v52 = vstv %s1732_s30  ;;  %s1744_s30 = sld [smem:[#allocation5 + $0x22]] }
  0xd8   : > { %v281_v53 = vpop.permute.xlu1 %280 }
  0xd9   : > { %287 = vst.msk [vmem:[#allocation4 + $0x1b] sm:$0xff] %vm275_vm3, %v281_v53 }
  0xda   : > { %v272_v54 = vpop.permute.xlu0 %271 }
  0xdb   : > { %277 = vst.msk [vmem:[#allocation4 + $0xb] sm:$0xff] %vm275_vm3, %v272_v54 }
  0xdc   : > { %v283_v56 = vpop.permute.xlu1 %282 }
  0xdd   : > { %288 = vst.msk [vmem:[#allocation4 + $0x23] sm:$0xff] %vm275_vm3, %v283_v56  ;;  %v588_v56 = vstv %s1733_s8  ;;  %s2369_s8 = sld [smem:[#allocation5 + $0x24]] }
  0xde   : > { %v2241_v57 = vld [vmem:[#allocation4] sm:$0xff] }
  0xdf   : > { %v299_v58 = vmul.f32 %v298_v55, %v2241_v57  ;;  %v313_v61 = vmul.f32 %v312_v59, %v2241_v57  ;;  %v327_v0 = vmul.f32 %v326_v63, %v2241_v57  ;;  %v341_v3 = vmul.f32 %v340_v2, %v2241_v57  ;;  %v2265_v11 = vld [vmem:[#allocation4 + $0x1] sm:$0xff] }
  0xe0   : > { %v355_v6 = vmul.f32 %v354_v5, %v2241_v57  ;;  %v369_v9 = vmul.f32 %v368_v8, %v2241_v57  ;;  %v391_v13 = vmul.f32 %v390_v12, %v2265_v11  ;;  %v405_v17 = vmul.f32 %v404_v16, %v2265_v11  ;;  %v2293_v31 = vld [vmem:[#allocation4 + $0x2] sm:$0xff] }
  0xe1   : > { %303 = vrot.lane.b32.xlu0 %v299_v58, %s2047_s3  ;;  %v419_v20 = vmul.f32 %v418_v19, %v2265_v11  ;;  %v433_v23 = vmul.f32 %v432_v22, %v2265_v11  ;;  %v447_v26 = vmul.f32 %v446_v25, %v2265_v11  ;;  %v461_v29 = vmul.f32 %v460_v28, %v2265_v11  ;;  %v2321_v51 = vld [vmem:[#allocation4 + $0x3] sm:$0xff] }
  0xe2   : > { %v2245_v60 = vld [vmem:[#allocation4 + $0x8] sm:$0xff]  ;;  %v483_v33 = vmul.f32 %v482_v32, %v2293_v31  ;;  %v497_v37 = vmul.f32 %v496_v36, %v2293_v31  ;;  %v511_v40 = vmul.f32 %v510_v39, %v2293_v31  ;;  %v525_v43 = vmul.f32 %v524_v42, %v2293_v31 }
  0xe3   : > { %v300_v62 = vmul.f32 %v298_v55, %v2245_v60  ;;  %v314_v1 = vmul.f32 %v312_v59, %v2245_v60  ;;  %v328_v4 = vmul.f32 %v326_v63, %v2245_v60  ;;  %v342_v7 = vmul.f32 %v340_v2, %v2245_v60  ;;  %v2271_v15 = vld [vmem:[#allocation4 + $0x9] sm:$0xff] }
  0xe4   : > { %v356_v10 = vmul.f32 %v354_v5, %v2245_v60  ;;  %v370_v14 = vmul.f32 %v368_v8, %v2245_v60  ;;  %v392_v18 = vmul.f32 %v390_v12, %v2271_v15  ;;  %v406_v21 = vmul.f32 %v404_v16, %v2271_v15  ;;  %v2299_v35 = vld [vmem:[#allocation4 + $0xa] sm:$0xff] }
  0xe5   : > { %317 = vrot.lane.b32.xlu0 %v313_v61, %s2048_s16  ;;  %305 = vrot.lane.b32.xlu1 %v300_v62, %s2047_s3  ;;  %v420_v24 = vmul.f32 %v418_v19, %v2271_v15  ;;  %v434_v27 = vmul.f32 %v432_v22, %v2271_v15  ;;  %v448_v30 = vmul.f32 %v446_v25, %v2271_v15  ;;  %v2327_v55 = vld [vmem:[#allocation4 + $0xb] sm:$0xff]  ;;  %v602_v61 = vstv %s1734_s15  ;;  %s2375_s15 = sld [smem:[#allocation5 + $0x25]] }
  0xe6   : > { %v462_v34 = vmul.f32 %v460_v28, %v2271_v15  ;;  %v484_v38 = vmul.f32 %v482_v32, %v2299_v35  ;;  %v498_v41 = vmul.f32 %v496_v36, %v2299_v35  ;;  %v512_v44 = vmul.f32 %v510_v39, %v2299_v35 }
  0xe7   : > { %v539_v46 = vmul.f32 %v538_v45, %v2293_v31  ;;  %v526_v47 = vmul.f32 %v524_v42, %v2299_v35  ;;  %v553_v49 = vmul.f32 %v552_v48, %v2293_v31  ;;  %v540_v50 = vmul.f32 %v538_v45, %v2299_v35 }
  0xe8   : > { %v575_v53 = vmul.f32 %v574_v52, %v2321_v51  ;;  %v554_v54 = vmul.f32 %v552_v48, %v2299_v35  ;;  %v589_v58 = vmul.f32 %v588_v56, %v2321_v51  ;;  %v576_v59 = vmul.f32 %v574_v52, %v2327_v55 }
  0xe9   : > { %331 = vrot.lane.b32.xlu0 %v327_v0, %s2049_s23  ;;  %319 = vrot.lane.b32.xlu1 %v314_v1, %s2048_s16  ;;  %v603_v62 = vmul.f32 %v602_v61, %v2321_v51  ;;  %v590_v63 = vmul.f32 %v588_v56, %v2327_v55  ;;  %v616_v0 = vstv %s1735_s18  ;;  %v604_v2 = vmul.f32 %v602_v61, %v2327_v55  ;;  %s2377_s18 = sld [smem:[#allocation5]] }
  0xea   : > { %v617_v1 = vmul.f32 %v616_v0, %v2321_v51  ;;  %v618_v5 = vmul.f32 %v616_v0, %v2327_v55  ;;  %v680_v16 = vstv %s1740_s29  ;;  %v694_v19 = vstv %s1741_s5  ;;  %s2406_s29 = sld [smem:[#allocation5 + $0x7]]  ;;  %s2414_s5 = sld [smem:[#allocation5 + $0x29]] }
  0xeb   : > { %v708_v22 = vstv %s1742_s17  ;;  %v722_v25 = vstv %s1743_s27  ;;  %v736_v28 = vstv %s1744_s30  ;;  %s2421_s17 = sld [smem:[#allocation5 + $0x2b]]  ;;  %s2430_s27 = sld [smem:[#allocation5 + $0x2c]] }
  0xec   : > { %s2440_s30 = sld [smem:[#allocation5 + $0x2d]] }
  0xed   : > { %345 = vrot.lane.b32.xlu0 %v341_v3, %s2050_s28  ;;  %333 = vrot.lane.b32.xlu1 %v328_v4, %s2049_s23  ;;  %v630_v3 = vstv %s1736_s19  ;;  %s2386_s19 = sld [smem:[#allocation5 + $0x26]] }
  0xee   : > { %v631_v4 = vmul.f32 %v630_v3, %v2321_v51  ;;  %v632_v8 = vmul.f32 %v630_v3, %v2327_v55 }
  0xef   : > { %v292_v42 = vstv %s2377_s18  ;;  %s2458_s18 = sld [smem:[#allocation5 + $0xe]] }
  0xf0   : > { %v294_v56 = vmul.f32 %v292_v42, %v2245_v60 }
  0xf1   : > { %359 = vrot.lane.b32.xlu0 %v355_v6, %s2051_s6  ;;  %347 = vrot.lane.b32.xlu1 %v342_v7, %s2050_s28  ;;  %v644_v6 = vstv %s1737_s22  ;;  %s2395_s22 = sld [smem:[#allocation5 + $0x27]] }
  0xf2   : > { %v645_v7 = vmul.f32 %v644_v6, %v2321_v51 }
  0xf3   : > { %v786_v48 = vstv %s2386_s19  ;;  %s2465_s19 = sld [smem:[#allocation5 + $0x30]] }
  0xf5   : > { %373 = vrot.lane.b32.xlu0 %v369_v9, %s2052_s26  ;;  %361 = vrot.lane.b32.xlu1 %v356_v10, %s2051_s6  ;;  %v2349_v9 = vld [vmem:[#allocation4 + $0x4] sm:$0xff]  ;;  %v666_v10 = vstv %s1739_s24  ;;  %s2404_s24 = sld [smem:[#allocation5 + $0x28]] }
  0xf6   : > { %v667_v12 = vmul.f32 %v666_v10, %v2349_v9 }
  0xf9   : > { %395 = vrot.lane.b32.xlu0 %v391_v13, %s2047_s3  ;;  %375 = vrot.lane.b32.xlu1 %v370_v14, %s2052_s26  ;;  %v646_v13 = vmul.f32 %v644_v6, %v2327_v55  ;;  %v2355_v14 = vld [vmem:[#allocation4 + $0xc] sm:$0xff] }
  0xfa   : > { %v724_v32 = vmul.f32 %v722_v25, %v2355_v14  ;;  %v738_v39 = vmul.f32 %v736_v28, %v2355_v14 }
  0xfb   : > { %v814_v3 = vstv %s2404_s24  ;;  %s2481_s24 = sld [smem:[#allocation5 + $0x33]] }
  0xfd   : > { %409 = vrot.lane.b32.xlu0 %v405_v17, %s2048_s16  ;;  %397 = vrot.lane.b32.xlu1 %v392_v18, %s2047_s3  ;;  %v681_v17 = vmul.f32 %v680_v16, %v2349_v9  ;;  %v668_v18 = vmul.f32 %v666_v10, %v2355_v14 }
 0x101   : > { %423 = vrot.lane.b32.xlu0 %v419_v20, %s2049_s23  ;;  %411 = vrot.lane.b32.xlu1 %v406_v21, %s2048_s16  ;;  %v695_v20 = vmul.f32 %v694_v19, %v2349_v9  ;;  %v682_v21 = vmul.f32 %v680_v16, %v2355_v14 }
 0x105   : > { %437 = vrot.lane.b32.xlu0 %v433_v23, %s2050_s28  ;;  %425 = vrot.lane.b32.xlu1 %v420_v24, %s2049_s23  ;;  %v709_v23 = vmul.f32 %v708_v22, %v2349_v9  ;;  %v696_v24 = vmul.f32 %v694_v19, %v2355_v14 }
 0x109   : > { %451 = vrot.lane.b32.xlu0 %v447_v26, %s2051_s6  ;;  %439 = vrot.lane.b32.xlu1 %v434_v27, %s2050_s28  ;;  %v723_v26 = vmul.f32 %v722_v25, %v2349_v9  ;;  %v710_v27 = vmul.f32 %v708_v22, %v2355_v14  ;;  %v2437_v25 = vld [vmem:[#allocation4 + $0x6] sm:$0xff] }
 0x10d   : > { %465 = vrot.lane.b32.xlu0 %v461_v29, %s2052_s26  ;;  %453 = vrot.lane.b32.xlu1 %v448_v30, %s2051_s6  ;;  %v737_v30 = vmul.f32 %v736_v28, %v2349_v9 }
 0x111   : > { %487 = vrot.lane.b32.xlu0 %v483_v33, %s2047_s3  ;;  %467 = vrot.lane.b32.xlu1 %v462_v34, %s2052_s26  ;;  %v2383_v33 = vld [vmem:[#allocation4 + $0x5] sm:$0xff]  ;;  %v758_v34 = vstv %s2369_s8  ;;  %s2449_s8 = sld [smem:[#allocation5 + $0x2e]] }
 0x112   : > { %v815_v10 = vmul.f32 %v814_v3, %v2383_v33 }
 0x115   : > { %501 = vrot.lane.b32.xlu0 %v497_v37, %s2048_s16  ;;  %489 = vrot.lane.b32.xlu1 %v484_v38, %s2047_s3  ;;  %v759_v38 = vmul.f32 %v758_v34, %v2383_v33 }
 0x119   : > { %515 = vrot.lane.b32.xlu0 %v511_v40, %s2049_s23  ;;  %503 = vrot.lane.b32.xlu1 %v498_v41, %s2048_s16  ;;  %v2392_v40 = vld [vmem:[#allocation4 + $0xd] sm:$0xff]  ;;  %v772_v41 = vstv %s2375_s15  ;;  %s2456_s15 = sld [smem:[#allocation5 + $0x2f]] }
 0x11a   : > { %v773_v45 = vmul.f32 %v772_v41, %v2383_v33 }
 0x11d   : > { %529 = vrot.lane.b32.xlu0 %v525_v43, %s2050_s28  ;;  %517 = vrot.lane.b32.xlu1 %v512_v44, %s2049_s23 }
 0x121   : > { %543 = vrot.lane.b32.xlu0 %v539_v46, %s2051_s6  ;;  %531 = vrot.lane.b32.xlu1 %v526_v47, %s2050_s28  ;;  %v760_v46 = vmul.f32 %v758_v34, %v2392_v40  ;;  %v293_v47 = vmul.f32 %v292_v42, %v2241_v57  ;;  %v878_v42 = vstv %s2440_s30  ;;  %s2516_s30 = sld [smem:[#allocation5 + $0x37]] }
 0x125   : > { %557 = vrot.lane.b32.xlu0 %v553_v49, %s2052_s26  ;;  %545 = vrot.lane.b32.xlu1 %v540_v50, %s2051_s6 }
 0x129   : > { %579 = vrot.lane.b32.xlu0 %v575_v53, %s2047_s3  ;;  %559 = vrot.lane.b32.xlu1 %v554_v54, %s2052_s26  ;;  %v787_v53 = vmul.f32 %v786_v48, %v2383_v33  ;;  %v774_v54 = vmul.f32 %v772_v41, %v2392_v40 }
 0x12d   : > { %593 = vrot.lane.b32.xlu0 %v589_v58, %s2048_s16  ;;  %581 = vrot.lane.b32.xlu1 %v576_v59, %s2047_s3  ;;  %v800_v58 = vstv %s2395_s22  ;;  %s2472_s22 = sld [smem:[#allocation5 + $0x32]] }
 0x12e   : > { %v801_v0 = vmul.f32 %v800_v58, %v2383_v33 }
 0x131   : > { %607 = vrot.lane.b32.xlu0 %v603_v62, %s2049_s23  ;;  %595 = vrot.lane.b32.xlu1 %v590_v63, %s2048_s16 }
 0x135   : > { %621 = vrot.lane.b32.xlu0 %v617_v1, %s2050_s28  ;;  %609 = vrot.lane.b32.xlu1 %v604_v2, %s2049_s23  ;;  %v788_v1 = vmul.f32 %v786_v48, %v2392_v40 }
 0x139   : > { %635 = vrot.lane.b32.xlu0 %v631_v4, %s2051_s6  ;;  %623 = vrot.lane.b32.xlu1 %v618_v5, %s2050_s28  ;;  %v384_v4 = vstv %s2406_s29  ;;  %s2491_s29 = sld [smem:[#allocation5 + $0x34]] }
 0x13d   : > { %649 = vrot.lane.b32.xlu0 %v645_v7, %s2052_s26  ;;  %637 = vrot.lane.b32.xlu1 %v632_v8, %s2051_s6 }
 0x141   : > { %671 = vrot.lane.b32.xlu0 %v667_v12, %s2047_s3  ;;  %651 = vrot.lane.b32.xlu1 %v646_v13, %s2052_s26  ;;  %v802_v12 = vmul.f32 %v800_v58, %v2392_v40  ;;  %v385_v13 = vmul.f32 %v384_v4, %v2265_v11  ;;  %v386_v11 = vmul.f32 %v384_v4, %v2271_v15  ;;  %v864_v15 = vstv %s2430_s27  ;;  %s2509_s27 = sld [smem:[#allocation5 + $0x15]] }
 0x145   : > { %685 = vrot.lane.b32.xlu0 %v681_v17, %s2048_s16  ;;  %673 = vrot.lane.b32.xlu1 %v668_v18, %s2047_s3  ;;  %v828_v18 = vstv %s2414_s5  ;;  %s2500_s5 = sld [smem:[#allocation5 + $0x35]] }
 0x146   : > { %v830_v34 = vmul.f32 %v828_v18, %v2392_v40 }
 0x149   : > { %699 = vrot.lane.b32.xlu0 %v695_v20, %s2049_s23  ;;  %687 = vrot.lane.b32.xlu1 %v682_v21, %s2048_s16 }
 0x14d   : > { %713 = vrot.lane.b32.xlu0 %v709_v23, %s2050_s28  ;;  %701 = vrot.lane.b32.xlu1 %v696_v24, %s2049_s23  ;;  %v829_v23 = vmul.f32 %v828_v18, %v2383_v33  ;;  %v816_v24 = vmul.f32 %v814_v3, %v2392_v40 }
 0x151   : > { %727 = vrot.lane.b32.xlu0 %v723_v26, %s2051_s6  ;;  %715 = vrot.lane.b32.xlu1 %v710_v27, %s2050_s28  ;;  %v850_v27 = vstv %s2421_s17  ;;  %s2507_s17 = sld [smem:[#allocation5 + $0x36]] }
 0x153   : > { %v304_v29 = vpop.permute.xlu0 %303 }
 0x154   : > { %v309_v49 = vadd.f32 %v304_v29, %v293_v47 }
 0x155   : > { %741 = vrot.lane.b32.xlu0 %v737_v30, %s2052_s26  ;;  %729 = vrot.lane.b32.xlu1 %v724_v32, %s2051_s6  ;;  %v851_v32 = vmul.f32 %v850_v27, %v2437_v25 }
 0x157   : > { %v306_v36 = vpop.permute.xlu1 %305  ;;  %v318_v37 = vpop.permute.xlu0 %317 }
 0x158   : > { %v323_v57 = vadd.f32 %v318_v37, %v309_v49  ;;  %v310_v59 = vadd.f32 %v306_v36, %v294_v56  ;;  %v2446_v36 = vld [vmem:[#allocation4 + $0xe] sm:$0xff]  ;;  %v892_v49 = vstv %s2449_s8  ;;  %s2523_s8 = sld [smem:[#allocation5 + $0x39]] }
 0x159   : > { %763 = vrot.lane.b32.xlu0 %v759_v38, %s2047_s3  ;;  %743 = vrot.lane.b32.xlu1 %v738_v39, %s2052_s26  ;;  %v865_v39 = vmul.f32 %v864_v15, %v2437_v25  ;;  %v852_v41 = vmul.f32 %v850_v27, %v2446_v36  ;;  %v866_v47 = vmul.f32 %v864_v15, %v2446_v36 }
 0x15a   : > { %v893_v56 = vmul.f32 %v892_v49, %v2437_v25  ;;  %v894_v3 = vmul.f32 %v892_v49, %v2446_v36 }
 0x15b   : > { %v320_v43 = vpop.permute.xlu1 %319  ;;  %v332_v44 = vpop.permute.xlu0 %331 }
 0x15c   : > { %v337_v61 = vadd.f32 %v332_v44, %v323_v57  ;;  %v324_v2 = vadd.f32 %v320_v43, %v310_v59  ;;  %v880_v57 = vmul.f32 %v878_v42, %v2446_v36 }
 0x15d   : > { %777 = vrot.lane.b32.xlu0 %v773_v45, %s2048_s16  ;;  %765 = vrot.lane.b32.xlu1 %v760_v46, %s2047_s3  ;;  %v879_v46 = vmul.f32 %v878_v42, %v2437_v25  ;;  %v984_v42 = vstv %s2500_s5  ;;  %s2574_s5 = sld [smem:[#allocation5 + $0x40]] }
 0x15f   : > { %v334_v50 = vpop.permute.xlu1 %333  ;;  %v346_v52 = vpop.permute.xlu0 %345 }
 0x160   : > { %v351_v60 = vadd.f32 %v346_v52, %v337_v61  ;;  %v338_v5 = vadd.f32 %v334_v50, %v324_v2  ;;  %v906_v61 = vstv %s2456_s15  ;;  %s2532_s15 = sld [smem:[#allocation5 + $0x3a]] }
 0x161   : > { %791 = vrot.lane.b32.xlu0 %v787_v53, %s2049_s23  ;;  %779 = vrot.lane.b32.xlu1 %v774_v54, %s2048_s16 }
 0x163   : > { %v348_v62 = vpop.permute.xlu1 %347  ;;  %v360_v63 = vpop.permute.xlu0 %359 }
 0x164   : > { %v365_v6 = vadd.f32 %v360_v63, %v351_v60  ;;  %v352_v16 = vadd.f32 %v348_v62, %v338_v5  ;;  %v476_v62 = vstv %s2458_s18  ;;  %v907_v60 = vmul.f32 %v906_v61, %v2437_v25  ;;  %s2542_s18 = sld [smem:[#allocation5 + $0x3b]] }
 0x165   : > { %805 = vrot.lane.b32.xlu0 %v801_v0, %s2050_s28  ;;  %793 = vrot.lane.b32.xlu1 %v788_v1, %s2049_s23  ;;  %v477_v4 = vmul.f32 %v476_v62, %v2293_v31  ;;  %v478_v31 = vmul.f32 %v476_v62, %v2299_v35  ;;  %v2498_v35 = vld [vmem:[#allocation4 + $0x20] sm:$0xff] }
 0x167   : > { %v362_v7 = vpop.permute.xlu1 %361  ;;  %v374_v8 = vpop.permute.xlu0 %373 }
 0x168   : > { %v379_v17 = vadd.f32 %v374_v8, %v365_v6  ;;  %v366_v19 = vadd.f32 %v362_v7, %v352_v16  ;;  %v920_v7 = vstv %s2465_s19  ;;  %s2551_s19 = sld [smem:[#allocation5 + $0x3c]] }
 0x169   : > { %819 = vrot.lane.b32.xlu0 %v815_v10, %s2051_s6  ;;  %807 = vrot.lane.b32.xlu1 %v802_v12, %s2050_s28  ;;  %v921_v16 = vmul.f32 %v920_v7, %v2437_v25 }
 0x16a   : > { %v387_v20 = vadd.f32 %v385_v13, %v379_v17  ;;  %v908_v17 = vmul.f32 %v906_v61, %v2446_v36  ;;  %v986_v61 = vmul.f32 %v984_v42, %v2498_v35 }
 0x16b   : > { %v376_v21 = vpop.permute.xlu1 %375  ;;  %v396_v22 = vpop.permute.xlu0 %395 }
 0x16c   : > { %v380_v26 = vadd.f32 %v376_v21, %v366_v19  ;;  %v401_v43 = vadd.f32 %v396_v22, %v387_v20  ;;  %v2488_v19 = vld [vmem:[#allocation4 + $0x18] sm:$0xff]  ;;  %v942_v20 = vstv %s2472_s22  ;;  %s2558_s22 = sld [smem:[#allocation5 + $0x3d]] }
 0x16d   : > { %833 = vrot.lane.b32.xlu0 %v829_v23, %s2052_s26  ;;  %821 = vrot.lane.b32.xlu1 %v816_v24, %s2051_s6  ;;  %v943_v24 = vmul.f32 %v942_v20, %v2488_v19 }
 0x16e   : > { %v388_v28 = vadd.f32 %v386_v11, %v380_v26  ;;  %v922_v11 = vmul.f32 %v920_v7, %v2446_v36  ;;  %v956_v26 = vstv %s2481_s24  ;;  %s2560_s24 = sld [smem:[#allocation5 + $0x1c]] }
 0x16f   : > { %v398_v29 = vpop.permute.xlu1 %397  ;;  %v410_v30 = vpop.permute.xlu0 %409 }
 0x170   : > { %v415_v48 = vadd.f32 %v410_v30, %v401_v43  ;;  %v402_v50 = vadd.f32 %v398_v29, %v388_v28  ;;  %v957_v29 = vmul.f32 %v956_v26, %v2488_v19  ;;  %v944_v30 = vmul.f32 %v942_v20, %v2498_v35 }
 0x171   : > { %855 = vrot.lane.b32.xlu0 %v851_v32, %s2047_s3  ;;  %835 = vrot.lane.b32.xlu1 %v830_v34, %s2052_s26  ;;  %v970_v32 = vstv %s2491_s29  ;;  %s2567_s29 = sld [smem:[#allocation5 + $0x3e]] }
 0x173   : > { %v412_v37 = vpop.permute.xlu1 %411  ;;  %v424_v38 = vpop.permute.xlu0 %423 }
 0x174   : > { %v429_v52 = vadd.f32 %v424_v38, %v415_v48  ;;  %v416_v58 = vadd.f32 %v412_v37, %v402_v50  ;;  %v971_v38 = vmul.f32 %v970_v32, %v2488_v19  ;;  %v972_v48 = vmul.f32 %v970_v32, %v2498_v35 }
 0x175   : > { %869 = vrot.lane.b32.xlu0 %v865_v39, %s2048_s16  ;;  %857 = vrot.lane.b32.xlu1 %v852_v41, %s2047_s3  ;;  %v958_v39 = vmul.f32 %v956_v26, %v2498_v35  ;;  %v1076_v32 = vstv %s2551_s19  ;;  %s2625_s19 = sld [smem:[#allocation5 + $0x47]] }
 0x177   : > { %v426_v44 = vpop.permute.xlu1 %425  ;;  %v438_v45 = vpop.permute.xlu0 %437 }
 0x178   : > { %v443_v59 = vadd.f32 %v438_v45, %v429_v52  ;;  %v430_v63 = vadd.f32 %v426_v44, %v416_v58  ;;  %v998_v52 = vstv %s2507_s17  ;;  %s2583_s17 = sld [smem:[#allocation5 + $0x41]] }
 0x179   : > { %883 = vrot.lane.b32.xlu0 %v879_v46, %s2049_s23  ;;  %871 = vrot.lane.b32.xlu1 %v866_v47, %s2048_s16  ;;  %v985_v47 = vmul.f32 %v984_v42, %v2488_v19 }
 0x17b   : > { %v440_v53 = vpop.permute.xlu1 %439  ;;  %v452_v54 = vpop.permute.xlu0 %451 }
 0x17c   : > { %v457_v0 = vadd.f32 %v452_v54, %v443_v59  ;;  %v444_v5 = vadd.f32 %v440_v53, %v430_v63  ;;  %v568_v53 = vstv %s2509_s27  ;;  %v999_v59 = vmul.f32 %v998_v52, %v2488_v19  ;;  %s2593_s27 = sld [smem:[#allocation5 + $0x42]] }
 0x17d   : > { %897 = vrot.lane.b32.xlu0 %v893_v56, %s2050_s28  ;;  %885 = vrot.lane.b32.xlu1 %v880_v57, %s2049_s23  ;;  %v569_v62 = vmul.f32 %v568_v53, %v2321_v51  ;;  %v570_v51 = vmul.f32 %v568_v53, %v2327_v55  ;;  %v1048_v55 = vstv %s2532_s15  ;;  %s2611_s15 = sld [smem:[#allocation5 + $0x23]] }
 0x17f   : > { %v454_v1 = vpop.permute.xlu1 %453  ;;  %v466_v2 = vpop.permute.xlu0 %465 }
 0x180   : > { %v471_v6 = vadd.f32 %v466_v2, %v457_v0  ;;  %v458_v8 = vadd.f32 %v454_v1, %v444_v5  ;;  %v1012_v1 = vstv %s2516_s30  ;;  %s2602_s30 = sld [smem:[#allocation5 + $0x43]] }
 0x181   : > { %911 = vrot.lane.b32.xlu0 %v907_v60, %s2051_s6  ;;  %899 = vrot.lane.b32.xlu1 %v894_v3, %s2050_s28  ;;  %v1013_v5 = vmul.f32 %v1012_v1, %v2488_v19 }
 0x182   : > { %v479_v10 = vadd.f32 %v477_v4, %v471_v6  ;;  %v1000_v6 = vmul.f32 %v998_v52, %v2498_v35 }
 0x183   : > { %v468_v12 = vpop.permute.xlu1 %467  ;;  %v488_v13 = vpop.permute.xlu0 %487 }
 0x184   : > { %v472_v18 = vadd.f32 %v468_v12, %v458_v8  ;;  %v493_v34 = vadd.f32 %v488_v13, %v479_v10  ;;  %v2539_v8 = vld [vmem:[#allocation4 + $0x19] sm:$0xff]  ;;  %v1034_v10 = vstv %s2523_s8  ;;  %s2609_s8 = sld [smem:[#allocation5 + $0x44]] }
 0x185   : > { %925 = vrot.lane.b32.xlu0 %v921_v16, %s2052_s26  ;;  %913 = vrot.lane.b32.xlu1 %v908_v17, %s2051_s6  ;;  %v1035_v17 = vmul.f32 %v1034_v10, %v2539_v8 }
 0x186   : > { %v480_v21 = vadd.f32 %v478_v31, %v472_v18  ;;  %v1014_v31 = vmul.f32 %v1012_v1, %v2498_v35  ;;  %v2548_v18 = vld [vmem:[#allocation4 + $0x21] sm:$0xff] }
 0x187   : > { %v490_v22 = vpop.permute.xlu1 %489  ;;  %v502_v23 = vpop.permute.xlu0 %501 }
 0x188   : > { %v507_v41 = vadd.f32 %v502_v23, %v493_v34  ;;  %v494_v43 = vadd.f32 %v490_v22, %v480_v21  ;;  %v1036_v22 = vmul.f32 %v1034_v10, %v2548_v18  ;;  %v1049_v23 = vmul.f32 %v1048_v55, %v2539_v8 }
 0x189   : > { %947 = vrot.lane.b32.xlu0 %v943_v24, %s2047_s3  ;;  %927 = vrot.lane.b32.xlu1 %v922_v11, %s2052_s26  ;;  %v1062_v24 = vstv %s2542_s18  ;;  %s2618_s18 = sld [smem:[#allocation5 + $0x45]] }
 0x18b   : > { %v504_v27 = vpop.permute.xlu1 %503  ;;  %v516_v28 = vpop.permute.xlu0 %515 }
 0x18c   : > { %v521_v44 = vadd.f32 %v516_v28, %v507_v41  ;;  %v508_v49 = vadd.f32 %v504_v27, %v494_v43  ;;  %v1050_v28 = vmul.f32 %v1048_v55, %v2548_v18  ;;  %v1077_v41 = vmul.f32 %v1076_v32, %v2539_v8 }
 0x18d   : > { %961 = vrot.lane.b32.xlu0 %v957_v29, %s2048_s16  ;;  %949 = vrot.lane.b32.xlu1 %v944_v30, %s2047_s3  ;;  %v1063_v29 = vmul.f32 %v1062_v24, %v2539_v8 }
 0x18f   : > { %v518_v15 = vpop.permute.xlu1 %517  ;;  %v530_v37 = vpop.permute.xlu0 %529 }
 0x190   : > { %v535_v50 = vadd.f32 %v530_v37, %v521_v44  ;;  %v522_v54 = vadd.f32 %v518_v15, %v508_v49  ;;  %v1090_v44 = vstv %s2558_s22  ;;  %s2634_s22 = sld [smem:[#allocation5 + $0x48]] }
 0x191   : > { %975 = vrot.lane.b32.xlu0 %v971_v38, %s2049_s23  ;;  %963 = vrot.lane.b32.xlu1 %v958_v39, %s2048_s16  ;;  %v1064_v39 = vmul.f32 %v1062_v24, %v2548_v18  ;;  %v1091_v52 = vmul.f32 %v1090_v44, %v2539_v8  ;;  %v1168_v24 = vstv %s2602_s30  ;;  %s2676_s30 = sld [smem:[#allocation5 + $0x4e]] }
 0x193   : > { %v532_v45 = vpop.permute.xlu1 %531  ;;  %v544_v46 = vpop.permute.xlu0 %543 }
 0x194   : > { %v549_v56 = vadd.f32 %v544_v46, %v535_v50  ;;  %v536_v63 = vadd.f32 %v532_v45, %v522_v54  ;;  %v660_v45 = vstv %s2560_s24  ;;  %v1078_v50 = vmul.f32 %v1076_v32, %v2548_v18  ;;  %s2644_s24 = sld [smem:[#allocation5 + $0x49]] }
 0x195   : > { %989 = vrot.lane.b32.xlu0 %v985_v47, %s2050_s28  ;;  %977 = vrot.lane.b32.xlu1 %v972_v48, %s2049_s23  ;;  %v661_v53 = vmul.f32 %v660_v45, %v2349_v9  ;;  %v662_v9 = vmul.f32 %v660_v45, %v2355_v14  ;;  %v1140_v14 = vstv %s2583_s17  ;;  %s2662_s17 = sld [smem:[#allocation5 + $0x2a]] }
 0x197   : > { %v546_v57 = vpop.permute.xlu1 %545  ;;  %v558_v58 = vpop.permute.xlu0 %557 }
 0x198   : > { %v563_v0 = vadd.f32 %v558_v58, %v549_v56  ;;  %v550_v2 = vadd.f32 %v546_v57, %v536_v63  ;;  %v1104_v57 = vstv %s2567_s29  ;;  %v1092_v63 = vmul.f32 %v1090_v44, %v2548_v18  ;;  %s2653_s29 = sld [smem:[#allocation5 + $0x4a]] }
 0x199   : > { %1003 = vrot.lane.b32.xlu0 %v999_v59, %s2051_s6  ;;  %991 = vrot.lane.b32.xlu1 %v986_v61, %s2050_s28 }
 0x19a   : > { %v571_v60 = vadd.f32 %v569_v62, %v563_v0  ;;  %v1105_v0 = vmul.f32 %v1104_v57, %v2539_v8 }
 0x19b   : > { %v560_v3 = vpop.permute.xlu1 %559  ;;  %v580_v4 = vpop.permute.xlu0 %579 }
 0x19c   : > { %v564_v7 = vadd.f32 %v560_v3, %v550_v2  ;;  %v585_v11 = vadd.f32 %v580_v4, %v571_v60  ;;  %v2590_v2 = vld [vmem:[#allocation4 + $0x1a] sm:$0xff]  ;;  %v1126_v60 = vstv %s2574_s5  ;;  %s2660_s5 = sld [smem:[#allocation5 + $0x4b]] }
 0x19d   : > { %1017 = vrot.lane.b32.xlu0 %v1013_v5, %s2052_s26  ;;  %1005 = vrot.lane.b32.xlu1 %v1000_v6, %s2051_s6  ;;  %v1106_v6 = vmul.f32 %v1104_v57, %v2548_v18 }
 0x19e   : > { %v572_v12 = vadd.f32 %v570_v51, %v564_v7  ;;  %v1127_v51 = vmul.f32 %v1126_v60, %v2590_v2  ;;  %v2599_v7 = vld [vmem:[#allocation4 + $0x22] sm:$0xff] }
 0x19f   : > { %v582_v13 = vpop.permute.xlu1 %581  ;;  %v594_v16 = vpop.permute.xlu0 %593 }
 0x1a0   : > { %v599_v30 = vadd.f32 %v594_v16, %v585_v11  ;;  %v586_v34 = vadd.f32 %v582_v13, %v572_v12  ;;  %v1128_v13 = vmul.f32 %v1126_v60, %v2599_v7  ;;  %v1141_v16 = vmul.f32 %v1140_v14, %v2590_v2 }
 0x1a1   : > { %1039 = vrot.lane.b32.xlu0 %v1035_v17, %s2047_s3  ;;  %1019 = vrot.lane.b32.xlu1 %v1014_v31, %s2052_s26  ;;  %v1154_v17 = vstv %s2593_s27  ;;  %s2669_s27 = sld [smem:[#allocation5 + $0x4c]] }
 0x1a3   : > { %v596_v20 = vpop.permute.xlu1 %595  ;;  %v608_v21 = vpop.permute.xlu0 %607 }
 0x1a4   : > { %v613_v15 = vadd.f32 %v608_v21, %v599_v30  ;;  %v600_v42 = vadd.f32 %v596_v20, %v586_v34  ;;  %v1142_v21 = vmul.f32 %v1140_v14, %v2599_v7  ;;  %v1169_v30 = vmul.f32 %v1168_v24, %v2590_v2 }
 0x1a5   : > { %1041 = vrot.lane.b32.xlu1 %v1036_v22, %s2047_s3  ;;  %1053 = vrot.lane.b32.xlu0 %v1049_v23, %s2048_s16  ;;  %v1155_v22 = vmul.f32 %v1154_v17, %v2590_v2 }
 0x1a7   : > { %v610_v26 = vpop.permute.xlu1 %609  ;;  %v622_v27 = vpop.permute.xlu0 %621 }
 0x1a8   : > { %v627_v43 = vadd.f32 %v622_v27, %v613_v15  ;;  %v614_v46 = vadd.f32 %v610_v26, %v600_v42  ;;  %v1182_v15 = vstv %s2609_s8  ;;  %s2685_s8 = sld [smem:[#allocation5 + $0x4f]] }
 0x1a9   : > { %1055 = vrot.lane.b32.xlu1 %v1050_v28, %s2048_s16  ;;  %1067 = vrot.lane.b32.xlu0 %v1063_v29, %s2049_s23  ;;  %v1156_v29 = vmul.f32 %v1154_v17, %v2599_v7  ;;  %v1183_v44 = vmul.f32 %v1182_v15, %v2590_v2  ;;  %v1260_v17 = vstv %s2653_s29  ;;  %s2727_s29 = sld [smem:[#allocation5 + $0x55]] }
 0x1ab   : > { %v624_v37 = vpop.permute.xlu1 %623  ;;  %v636_v38 = vpop.permute.xlu0 %635 }
 0x1ac   : > { %v641_v47 = vadd.f32 %v636_v38, %v627_v43  ;;  %v628_v54 = vadd.f32 %v624_v37, %v614_v46  ;;  %v752_v37 = vstv %s2611_s15  ;;  %v1170_v43 = vmul.f32 %v1168_v24, %v2599_v7  ;;  %s2695_s15 = sld [smem:[#allocation5 + $0x50]] }
 0x1ad   : > { %1069 = vrot.lane.b32.xlu1 %v1064_v39, %s2049_s23  ;;  %1081 = vrot.lane.b32.xlu0 %v1077_v41, %s2050_s28  ;;  %v753_v45 = vmul.f32 %v752_v37, %v2383_v33  ;;  %v754_v33 = vmul.f32 %v752_v37, %v2392_v40  ;;  %v1232_v40 = vstv %s2634_s22  ;;  %s2715_s22 = sld [smem:[#allocation5 + $0x31]] }
 0x1af   : > { %v638_v48 = vpop.permute.xlu1 %637  ;;  %v650_v49 = vpop.permute.xlu0 %649 }
 0x1b0   : > { %v655_v56 = vadd.f32 %v650_v49, %v641_v47  ;;  %v642_v58 = vadd.f32 %v638_v48, %v628_v54  ;;  %v1196_v48 = vstv %s2618_s18  ;;  %v1184_v54 = vmul.f32 %v1182_v15, %v2599_v7  ;;  %s2704_s18 = sld [smem:[#allocation5 + $0x51]] }
 0x1b1   : > { %1083 = vrot.lane.b32.xlu1 %v1078_v50, %s2050_s28  ;;  %1095 = vrot.lane.b32.xlu0 %v1091_v52, %s2051_s6 }
 0x1b2   : > { %v663_v59 = vadd.f32 %v661_v53, %v655_v56  ;;  %v1197_v56 = vmul.f32 %v1196_v48, %v2590_v2 }
 0x1b3   : > { %v652_v61 = vpop.permute.xlu1 %651  ;;  %v672_v62 = vpop.permute.xlu0 %671 }
 0x1b4   : > { %v656_v1 = vadd.f32 %v652_v61, %v642_v58  ;;  %v677_v31 = vadd.f32 %v672_v62, %v663_v59  ;;  %v2641_v58 = vld [vmem:[#allocation4 + $0x1b] sm:$0xff]  ;;  %v1218_v59 = vstv %s2625_s19  ;;  %s2711_s19 = sld [smem:[#allocation5 + $0x52]] }
 0x1b5   : > { %1097 = vrot.lane.b32.xlu1 %v1092_v63, %s2051_s6  ;;  %1109 = vrot.lane.b32.xlu0 %v1105_v0, %s2052_s26  ;;  %v1198_v0 = vmul.f32 %v1196_v48, %v2599_v7 }
 0x1b6   : > { %v664_v3 = vadd.f32 %v662_v9, %v656_v1  ;;  %v1219_v9 = vmul.f32 %v1218_v59, %v2641_v58  ;;  %v2650_v1 = vld [vmem:[#allocation4 + $0x23] sm:$0xff] }
 0x1b7   : > { %v674_v4 = vpop.permute.xlu1 %673  ;;  %v686_v5 = vpop.permute.xlu0 %685 }
 0x1b8   : > { %v691_v23 = vadd.f32 %v686_v5, %v677_v31  ;;  %v678_v11 = vadd.f32 %v674_v4, %v664_v3  ;;  %v1220_v4 = vmul.f32 %v1218_v59, %v2650_v1  ;;  %v1233_v5 = vmul.f32 %v1232_v40, %v2641_v58 }
 0x1b9   : > { %1111 = vrot.lane.b32.xlu1 %v1106_v6, %s2052_s26  ;;  %1131 = vrot.lane.b32.xlu0 %v1127_v51, %s2047_s3  ;;  %v1246_v6 = vstv %s2644_s24  ;;  %s2720_s24 = sld [smem:[#allocation5 + $0x53]] }
 0x1bb   : > { %v688_v10 = vpop.permute.xlu1 %687  ;;  %v700_v12 = vpop.permute.xlu0 %699 }
 0x1bc   : > { %v705_v26 = vadd.f32 %v700_v12, %v691_v23  ;;  %v692_v32 = vadd.f32 %v688_v10, %v678_v11  ;;  %v1234_v12 = vmul.f32 %v1232_v40, %v2650_v1  ;;  %v1261_v23 = vmul.f32 %v1260_v17, %v2641_v58 }
 0x1bd   : > { %1133 = vrot.lane.b32.xlu1 %v1128_v13, %s2047_s3  ;;  %1145 = vrot.lane.b32.xlu0 %v1141_v16, %s2048_s16  ;;  %v1247_v13 = vmul.f32 %v1246_v6, %v2641_v58 }
 0x1bf   : > { %v702_v55 = vpop.permute.xlu1 %701  ;;  %v714_v20 = vpop.permute.xlu0 %713 }
 0x1c0   : > { %v719_v34 = vadd.f32 %v714_v20, %v705_v26  ;;  %v706_v38 = vadd.f32 %v702_v55, %v692_v32  ;;  %v1274_v26 = vstv %s2660_s5  ;;  %s2736_s5 = sld [smem:[#allocation5 + $0x56]] }
 0x1c1   : > { %1147 = vrot.lane.b32.xlu1 %v1142_v21, %s2048_s16  ;;  %1159 = vrot.lane.b32.xlu0 %v1155_v22, %s2049_s23  ;;  %v1248_v22 = vmul.f32 %v1246_v6, %v2650_v1  ;;  %v1275_v15 = vmul.f32 %v1274_v26, %v2641_v58 }
 0x1c3   : > { %v716_v27 = vpop.permute.xlu1 %715  ;;  %v728_v28 = vpop.permute.xlu0 %727 }
 0x1c4   : > { %v733_v39 = vadd.f32 %v728_v28, %v719_v34  ;;  %v720_v46 = vadd.f32 %v716_v27, %v706_v38  ;;  %v844_v27 = vstv %s2662_s17  ;;  %v1262_v34 = vmul.f32 %v1260_v17, %v2650_v1  ;;  %s2746_s17 = sld [smem:[#allocation5 + $0x57]] }
 0x1c5   : > { %1161 = vrot.lane.b32.xlu1 %v1156_v29, %s2049_s23  ;;  %1173 = vrot.lane.b32.xlu0 %v1169_v30, %s2050_s28  ;;  %v845_v37 = vmul.f32 %v844_v27, %v2437_v25  ;;  %v846_v25 = vmul.f32 %v844_v27, %v2446_v36 }
 0x1c7   : > { %v730_v41 = vpop.permute.xlu1 %729  ;;  %v742_v42 = vpop.permute.xlu0 %741 }
 0x1c8   : > { %v747_v47 = vadd.f32 %v742_v42, %v733_v39  ;;  %v734_v49 = vadd.f32 %v730_v41, %v720_v46  ;;  %v1288_v41 = vstv %s2669_s27  ;;  %v1276_v46 = vmul.f32 %v1274_v26, %v2650_v1  ;;  %s2755_s27 = sld [smem:[#allocation5 + $0x58]] }
 0x1c9   : > { %1175 = vrot.lane.b32.xlu1 %v1170_v43, %s2050_s28  ;;  %1187 = vrot.lane.b32.xlu0 %v1183_v44, %s2051_s6 }
 0x1ca   : > { %v755_v50 = vadd.f32 %v753_v45, %v747_v47  ;;  %v1289_v47 = vmul.f32 %v1288_v41, %v2641_v58 }
 0x1cb   : > { %v744_v52 = vpop.permute.xlu1 %743  ;;  %v764_v53 = vpop.permute.xlu0 %763 }
 0x1cc   : > { %v748_v57 = vadd.f32 %v744_v52, %v734_v49  ;;  %v769_v51 = vadd.f32 %v764_v53, %v755_v50  ;;  %v2692_v50 = vld [vmem:[#allocation4 + $0x1c] sm:$0xff]  ;;  %v1310_v52 = vstv %s2676_s30  ;;  %s2762_s30 = sld [smem:[#allocation5 + $0x59]] }
 0x1cd   : > { %1189 = vrot.lane.b32.xlu1 %v1184_v54, %s2051_s6  ;;  %1201 = vrot.lane.b32.xlu0 %v1197_v56, %s2052_s26  ;;  %v1311_v36 = vmul.f32 %v1310_v52, %v2692_v50 }
 0x1ce   : > { %v756_v61 = vadd.f32 %v754_v33, %v748_v57  ;;  %v1290_v33 = vmul.f32 %v1288_v41, %v2650_v1 }
 0x1cf   : > { %v766_v62 = vpop.permute.xlu1 %765  ;;  %v778_v63 = vpop.permute.xlu0 %777 }
 0x1d0   : > { %v783_v16 = vadd.f32 %v778_v63, %v769_v51  ;;  %v770_v31 = vadd.f32 %v766_v62, %v756_v61  ;;  %v2701_v61 = vld [vmem:[#allocation4 + $0x24] sm:$0xff]  ;;  %v1324_v62 = vstv %s2685_s8  ;;  %s2766_s8 = sld [smem:[#allocation5 + $0x38]] }
 0x1d1   : > { %1203 = vrot.lane.b32.xlu1 %v1198_v0, %s2052_s26  ;;  %1223 = vrot.lane.b32.xlu0 %v1219_v9, %s2047_s3  ;;  %v1312_v9 = vmul.f32 %v1310_v52, %v2701_v61  ;;  %v1325_v40 = vmul.f32 %v1324_v62, %v2692_v50  ;;  %v1326_v51 = vmul.f32 %v1324_v62, %v2701_v61  ;;  %v2752_v52 = vld [vmem:[#allocation4 + $0x25] sm:$0xff]  ;;  %v1430_v62 = vstv %s2746_s17  ;;  %s2822_s17 = sld [smem:[#allocation5 + $0x61]] }
 0x1d3   : > { %v780_v60 = vpop.permute.xlu1 %779  ;;  %v792_v3 = vpop.permute.xlu0 %791 }
 0x1d4   : > { %v797_v55 = vadd.f32 %v792_v3, %v783_v16  ;;  %v784_v24 = vadd.f32 %v780_v60, %v770_v31 }
 0x1d5   : > { %1225 = vrot.lane.b32.xlu1 %v1220_v4, %s2047_s3  ;;  %1237 = vrot.lane.b32.xlu0 %v1233_v5, %s2048_s16  ;;  %v1338_v4 = vstv %s2695_s15  ;;  %s2771_s15 = sld [smem:[#allocation5 + $0x5a]] }
 0x1d6   : > { %v1340_v31 = vmul.f32 %v1338_v4, %v2701_v61 }
 0x1d7   : > { %v794_v14 = vpop.permute.xlu1 %793  ;;  %v806_v10 = vpop.permute.xlu0 %805 }
 0x1d8   : > { %v811_v11 = vadd.f32 %v806_v10, %v797_v55  ;;  %v798_v28 = vadd.f32 %v794_v14, %v784_v24  ;;  %v1339_v14 = vmul.f32 %v1338_v4, %v2692_v50  ;;  %v1444_v4 = vstv %s2755_s27 }
 0x1d9   : > { %1239 = vrot.lane.b32.xlu1 %v1234_v12, %s2048_s16  ;;  %1251 = vrot.lane.b32.xlu0 %v1247_v13, %s2049_s23  ;;  %v1352_v13 = vstv %s2704_s18  ;;  %s2778_s18 = sld [smem:[#allocation5 + $0x5c]] }
 0x1da   : > { %v1353_v55 = vmul.f32 %v1352_v13, %v2692_v50  ;;  %v1354_v26 = vmul.f32 %v1352_v13, %v2701_v61  ;;  %v1028_v13 = vstv %s2766_s8 }
 0x1db   : > { %v808_v20 = vpop.permute.xlu1 %807  ;;  %v820_v21 = vpop.permute.xlu0 %819 }
 0x1dc   : > { %v825_v29 = vadd.f32 %v820_v21, %v811_v11  ;;  %v812_v38 = vadd.f32 %v808_v20, %v798_v28 }
 0x1dd   : > { %1253 = vrot.lane.b32.xlu1 %v1248_v22, %s2049_s23  ;;  %1265 = vrot.lane.b32.xlu0 %v1261_v23, %s2050_s28  ;;  %v1366_v22 = vstv %s2711_s19  ;;  %v936_v23 = vstv %s2715_s22  ;;  %s2787_s19 = sld [smem:[#allocation5 + $0x5d]]  ;;  %s2797_s22 = sld [smem:[#allocation5 + $0x5e]] }
 0x1de   : > { %v1367_v27 = vmul.f32 %v1366_v22, %v2692_v50  ;;  %v938_v41 = vmul.f32 %v936_v23, %v2498_v35 }
 0x1df   : > { %v822_v30 = vpop.permute.xlu1 %821  ;;  %v834_v32 = vpop.permute.xlu0 %833 }
 0x1e0   : > { %v839_v39 = vadd.f32 %v834_v32, %v825_v29  ;;  %v826_v42 = vadd.f32 %v822_v30, %v812_v38  ;;  %v937_v29 = vmul.f32 %v936_v23, %v2488_v19  ;;  %v1380_v32 = vstv %s2720_s24  ;;  %s2806_s24 = sld [smem:[#allocation5 + $0x5f]] }
 0x1e1   : > { %1267 = vrot.lane.b32.xlu1 %v1262_v34, %s2050_s28  ;;  %1279 = vrot.lane.b32.xlu0 %v1275_v15, %s2051_s6  ;;  %v1368_v38 = vmul.f32 %v1366_v22, %v2701_v61  ;;  %v1472_v23 = vstv %s2771_s15 }
 0x1e2   : > { %v847_v43 = vadd.f32 %v845_v37, %v839_v39  ;;  %v1381_v39 = vmul.f32 %v1380_v32, %v2692_v50 }
 0x1e3   : > { %v836_v44 = vpop.permute.xlu1 %835  ;;  %v856_v45 = vpop.permute.xlu0 %855 }
 0x1e4   : > { %v840_v48 = vadd.f32 %v836_v44, %v826_v42  ;;  %v861_v49 = vadd.f32 %v856_v45, %v847_v43  ;;  %v2743_v43 = vld [vmem:[#allocation4 + $0x1d] sm:$0xff]  ;;  %v1402_v44 = vstv %s2727_s29  ;;  %s2813_s29 = sld [smem:[#allocation5 + $0x60]] }
 0x1e5   : > { %1281 = vrot.lane.b32.xlu1 %v1276_v46, %s2051_s6  ;;  %1293 = vrot.lane.b32.xlu0 %v1289_v47, %s2052_s26  ;;  %v1403_v35 = vmul.f32 %v1402_v44, %v2743_v43 }
 0x1e6   : > { %v848_v53 = vadd.f32 %v846_v25, %v840_v48  ;;  %v1382_v25 = vmul.f32 %v1380_v32, %v2701_v61  ;;  %v2794_v32 = vld [vmem:[#allocation4 + $0x1e] sm:$0xff] }
 0x1e7   : > { %v858_v54 = vpop.permute.xlu1 %857  ;;  %v870_v56 = vpop.permute.xlu0 %869 }
 0x1e8   : > { %v862_v57 = vadd.f32 %v858_v54, %v848_v53  ;;  %v875_v59 = vadd.f32 %v870_v56, %v861_v49  ;;  %v1416_v53 = vstv %s2736_s5  ;;  %s2817_s5 = sld [smem:[#allocation5 + $0x3f]] }
 0x1e9   : > { %1295 = vrot.lane.b32.xlu1 %v1290_v33, %s2052_s26  ;;  %1315 = vrot.lane.b32.xlu0 %v1311_v36, %s2047_s3  ;;  %v1404_v33 = vmul.f32 %v1402_v44, %v2752_v52  ;;  %v1417_v36 = vmul.f32 %v1416_v53, %v2743_v43 }
 0x1eb   : > { %v872_v63 = vpop.permute.xlu1 %871  ;;  %v884_v0 = vpop.permute.xlu0 %883 }
 0x1ec   : > { %v876_v60 = vadd.f32 %v872_v63, %v862_v57  ;;  %v889_v3 = vadd.f32 %v884_v0, %v875_v59 }
 0x1ed   : > { %1317 = vrot.lane.b32.xlu1 %v1312_v9, %s2047_s3  ;;  %1329 = vrot.lane.b32.xlu0 %v1325_v40, %s2048_s16  ;;  %v1418_v9 = vmul.f32 %v1416_v53, %v2752_v52  ;;  %v1431_v40 = vmul.f32 %v1430_v62, %v2743_v43 }
 0x1ef   : > { %v886_v5 = vpop.permute.xlu1 %885  ;;  %v898_v6 = vpop.permute.xlu0 %897 }
 0x1f0   : > { %v890_v10 = vadd.f32 %v886_v5, %v876_v60  ;;  %v903_v12 = vadd.f32 %v898_v6, %v889_v3 }
 0x1f1   : > { %1331 = vrot.lane.b32.xlu1 %v1326_v51, %s2048_s16  ;;  %1343 = vrot.lane.b32.xlu0 %v1339_v14, %s2049_s23  ;;  %v1432_v51 = vmul.f32 %v1430_v62, %v2752_v52  ;;  %v1445_v14 = vmul.f32 %v1444_v4, %v2743_v43 }
 0x1f3   : > { %v900_v16 = vpop.permute.xlu1 %899  ;;  %v912_v17 = vpop.permute.xlu0 %911 }
 0x1f4   : > { %v904_v20 = vadd.f32 %v900_v16, %v890_v10  ;;  %v917_v21 = vadd.f32 %v912_v17, %v903_v12  ;;  %v1458_v12 = vstv %s2762_s30 }
 0x1f5   : > { %1345 = vrot.lane.b32.xlu1 %v1340_v31, %s2049_s23  ;;  %1357 = vrot.lane.b32.xlu0 %v1353_v55, %s2050_s28  ;;  %v1446_v55 = vmul.f32 %v1444_v4, %v2752_v52 }
 0x1f7   : > { %v914_v24 = vpop.permute.xlu1 %913  ;;  %v926_v11 = vpop.permute.xlu0 %925 }
 0x1f8   : > { %v918_v28 = vadd.f32 %v914_v24, %v904_v20  ;;  %v931_v30 = vadd.f32 %v926_v11, %v917_v21  ;;  %v1459_v20 = vmul.f32 %v1458_v12, %v2743_v43  ;;  %v1029_v21 = vmul.f32 %v1028_v13, %v2539_v8 }
 0x1f9   : > { %1359 = vrot.lane.b32.xlu1 %v1354_v26, %s2050_s28  ;;  %1371 = vrot.lane.b32.xlu0 %v1367_v27, %s2051_s6 }
 0x1fa   : > { %v939_v34 = vadd.f32 %v937_v29, %v931_v30  ;;  %v1473_v29 = vmul.f32 %v1472_v23, %v2743_v43  ;;  %v1030_v30 = vmul.f32 %v1028_v13, %v2548_v18  ;;  %v1508_v18 = vstv %s2787_s19  ;;  %s1590_s19 = scalar_lea.sflag [#allocation7], %s2209_s7 }
 0x1fb   : > { %v928_v15 = vpop.permute.xlu1 %927  ;;  %v948_v37 = vpop.permute.xlu0 %947 }
 0x1fc   : > { %v932_v42 = vadd.f32 %v928_v15, %v918_v28  ;;  %v953_v19 = vadd.f32 %v948_v37, %v939_v34  ;;  %v1460_v28 = vmul.f32 %v1458_v12, %v2752_v52  ;;  %v1494_v34 = vstv %s2778_s18 }
 0x1fd   : > { %1373 = vrot.lane.b32.xlu1 %v1368_v38, %s2051_s6  ;;  %1385 = vrot.lane.b32.xlu0 %v1381_v39, %s2052_s26  ;;  %v1474_v39 = vmul.f32 %v1472_v23, %v2752_v52 }
 0x1fe   : > { %v940_v45 = vadd.f32 %v938_v41, %v932_v42  ;;  %v1495_v41 = vmul.f32 %v1494_v34, %v2794_v32  ;;  %v2803_v42 = vld [vmem:[#allocation4 + $0x26] sm:$0xff] }
 0x1ff   : > { %v950_v46 = vpop.permute.xlu1 %949  ;;  %v962_v47 = vpop.permute.xlu0 %961 }
 0x200   : > { %v954_v48 = vadd.f32 %v950_v46, %v940_v45  ;;  %v967_v49 = vadd.f32 %v962_v47, %v953_v19  ;;  %v1496_v45 = vmul.f32 %v1494_v34, %v2803_v42  ;;  %v1509_v46 = vmul.f32 %v1508_v18, %v2794_v32 }
 0x201   : > { %1387 = vrot.lane.b32.xlu1 %v1382_v25, %s2052_s26  ;;  %1407 = vrot.lane.b32.xlu0 %v1403_v35, %s2047_s3  ;;  %v1522_v47 = vstv %s2797_s22  ;;  %s2053_s22 = smov [#allocation10]  }
 0x202   : > { %v1523_v53 = vmul.f32 %v1522_v47, %v2794_v32  ;;  %v1524_v62 = vmul.f32 %v1522_v47, %v2803_v42 }
 0x203   : > { %v964_v54 = vpop.permute.xlu1 %963  ;;  %v976_v56 = vpop.permute.xlu0 %975 }
 0x204   : > { %v968_v57 = vadd.f32 %v964_v54, %v954_v48  ;;  %v981_v59 = vadd.f32 %v976_v56, %v967_v49  ;;  %v1510_v49 = vmul.f32 %v1508_v18, %v2803_v42  ;;  %v1536_v56 = vstv %s2806_s24  ;;  %s1956_s24 = sshll.u32 %s2053_s22, 4  ;;  %s1957_s24 = int_to_ptr.vmem [resolvable:$false] %s1956_s24 }
 0x205   : > { %1409 = vrot.lane.b32.xlu1 %v1404_v33, %s2047_s3  ;;  %1421 = vrot.lane.b32.xlu0 %v1417_v36, %s2048_s16 }
 0x207   : > { %v978_v63 = vpop.permute.xlu1 %977  ;;  %v990_v0 = vpop.permute.xlu0 %989 }
 0x208   : > { %v982_v60 = vadd.f32 %v978_v63, %v968_v57  ;;  %v995_v3 = vadd.f32 %v990_v0, %v981_v59  ;;  %v1537_v63 = vmul.f32 %v1536_v56, %v2794_v32 }
 0x209   : > { %1423 = vrot.lane.b32.xlu1 %v1418_v9, %s2048_s16  ;;  %1435 = vrot.lane.b32.xlu0 %v1431_v40, %s2049_s23  ;;  %v1550_v40 = vstv %s2813_s29  ;;  %s1958_s29 = scalar_lea.vmem %s1957_s24, 512 }
 0x20b   : > { %v992_v5 = vpop.permute.xlu1 %991  ;;  %v1004_v6 = vpop.permute.xlu0 %1003 }
 0x20c   : > { %v996_v10 = vadd.f32 %v992_v5, %v982_v60  ;;  %v1009_v16 = vadd.f32 %v1004_v6, %v995_v3  ;;  %v1120_v60 = vstv %s2817_s5 }
 0x20d   : > { %1437 = vrot.lane.b32.xlu1 %v1432_v51, %s2049_s23  ;;  %1449 = vrot.lane.b32.xlu0 %v1445_v14, %s2050_s28  ;;  %v1538_v51 = vmul.f32 %v1536_v56, %v2803_v42  ;;  %v1551_v14 = vmul.f32 %v1550_v40, %v2794_v32  ;;  %v1121_v12 = vmul.f32 %v1120_v60, %v2590_v2 }
 0x20e   : > { %v1122_v23 = vmul.f32 %v1120_v60, %v2599_v7 }
 0x20f   : > { %v1006_v17 = vpop.permute.xlu1 %1005  ;;  %v1018_v31 = vpop.permute.xlu0 %1017 }
 0x210   : > { %v1023_v22 = vadd.f32 %v1018_v31, %v1009_v16  ;;  %v1010_v24 = vadd.f32 %v1006_v17, %v996_v10  ;;  %v1564_v16 = vstv %s2822_s17 }
 0x211   : > { %1451 = vrot.lane.b32.xlu1 %v1446_v55, %s2050_s28  ;;  %1463 = vrot.lane.b32.xlu0 %v1459_v20, %s2051_s6 }
 0x212   : > { %v1031_v11 = vadd.f32 %v1029_v21, %v1023_v22  ;;  %v1552_v21 = vmul.f32 %v1550_v40, %v2803_v42  ;;  %v1565_v22 = vmul.f32 %v1564_v16, %v2794_v32 }
 0x213   : > { %v1020_v26 = vpop.permute.xlu1 %1019  ;;  %v1040_v27 = vpop.permute.xlu0 %1039 }
 0x214   : > { %v1024_v8 = vadd.f32 %v1020_v26, %v1010_v24  ;;  %v1045_v25 = vadd.f32 %v1040_v27, %v1031_v11  ;;  %v1566_v27 = vmul.f32 %v1564_v16, %v2803_v42 }
 0x215   : > { %1465 = vrot.lane.b32.xlu1 %v1460_v28, %s2051_s6  ;;  %1477 = vrot.lane.b32.xlu0 %v1473_v29, %s2052_s26 }
 0x216   : > { %v1032_v15 = vadd.f32 %v1030_v30, %v1024_v8 }
 0x217   : > { %v1042_v37 = vpop.permute.xlu1 %1041  ;;  %v1054_v38 = vpop.permute.xlu0 %1053 }
 0x218   : > { %v1059_v54 = vadd.f32 %v1054_v38, %v1045_v25  ;;  %v1046_v33 = vadd.f32 %v1042_v37, %v1032_v15 }
 0x219   : > { %1479 = vrot.lane.b32.xlu1 %v1474_v39, %s2052_s26  ;;  %1499 = vrot.lane.b32.xlu0 %v1495_v41, %s2047_s3 }
 0x21b   : > { %v1056_v19 = vpop.permute.xlu1 %1055  ;;  %v1068_v44 = vpop.permute.xlu0 %1067 }
 0x21c   : > { %v1073_v36 = vadd.f32 %v1068_v44, %v1059_v54  ;;  %v1060_v0 = vadd.f32 %v1056_v19, %v1046_v33 }
 0x21d   : > { %1501 = vrot.lane.b32.xlu1 %v1496_v45, %s2047_s3  ;;  %1513 = vrot.lane.b32.xlu0 %v1509_v46, %s2048_s16  ;;  %s1780_s3 = sld [smem:[#allocation5 + $0x46]] }
 0x21f   : > { %v1070_v35 = vpop.permute.xlu1 %1069  ;;  %v1082_v48 = vpop.permute.xlu0 %1081 }
 0x220   : > { %v1087_v9 = vadd.f32 %v1082_v48, %v1073_v36  ;;  %v1074_v3 = vadd.f32 %v1070_v35, %v1060_v0 }
 0x221   : > { %1515 = vrot.lane.b32.xlu1 %v1510_v49, %s2048_s16  ;;  %1527 = vrot.lane.b32.xlu0 %v1523_v53, %s2049_s23  ;;  %s1787_s16 = sld [smem:[#allocation5 + $0x4d]] }
 0x223   : > { %v1084_v57 = vpop.permute.xlu1 %1083  ;;  %v1096_v59 = vpop.permute.xlu0 %1095  ;;  %v1212_v19 = vstv %s1780_s3 }
 0x224   : > { %v1101_v4 = vadd.f32 %v1096_v59, %v1087_v9  ;;  %v1088_v10 = vadd.f32 %v1084_v57, %v1074_v3  ;;  %v1213_v48 = vmul.f32 %v1212_v19, %v2641_v58  ;;  %v1214_v36 = vmul.f32 %v1212_v19, %v2650_v1 }
 0x225   : > { %1529 = vrot.lane.b32.xlu1 %v1524_v62, %s2049_s23  ;;  %1541 = vrot.lane.b32.xlu0 %v1537_v63, %s2050_s28  ;;  %s1794_s23 = sld [smem:[#allocation5 + $0x54]] }
 0x227   : > { %v1098_v5 = vpop.permute.xlu1 %1097  ;;  %v1110_v6 = vpop.permute.xlu0 %1109 }
 0x228   : > { %v1115_v13 = vadd.f32 %v1110_v6, %v1101_v4  ;;  %v1102_v17 = vadd.f32 %v1098_v5, %v1088_v10  ;;  %v1304_v10 = vstv %s1787_s16 }
 0x229   : > { %1543 = vrot.lane.b32.xlu1 %v1538_v51, %s2050_s28  ;;  %1555 = vrot.lane.b32.xlu0 %v1551_v14, %s2051_s6  ;;  %s1801_s28 = sld [smem:[#allocation5 + $0x5b]] }
 0x22a   : > { %v1123_v31 = vadd.f32 %v1121_v12, %v1115_v13 }
 0x22b   : > { %v1112_v55 = vpop.permute.xlu1 %1111  ;;  %v1132_v20 = vpop.permute.xlu0 %1131 }
 0x22c   : > { %v1116_v24 = vadd.f32 %v1112_v55, %v1102_v17  ;;  %v1137_v30 = vadd.f32 %v1132_v20, %v1123_v31  ;;  %v1305_v55 = vmul.f32 %v1304_v10, %v2692_v50 }
 0x22d   : > { %1557 = vrot.lane.b32.xlu1 %v1552_v21, %s2051_s6  ;;  %1569 = vrot.lane.b32.xlu0 %v1565_v22, %s2052_s26  ;;  %s1710_s6 = sshll.u32 %s2209_s7, 4 }
 0x22e   : > { %v1124_v2 = vadd.f32 %v1122_v23, %v1116_v24  ;;  %s190_s27 = scalar_lea.vmem [#allocation10], %s1710_s6 }
 0x22f   : > { %v1134_v11 = vpop.permute.xlu1 %1133  ;;  %v1146_v26 = vpop.permute.xlu0 %1145  ;;  %s1603_s30 = sshll.u32 %s190_s27, 4  ;;  %s2861_s30 = int_to_ptr.vmem [resolvable:$true] %s1603_s30 }
 0x230   : > { %v1151_v15 = vadd.f32 %v1146_v26, %v1137_v30  ;;  %v1138_v7 = vadd.f32 %v1134_v11, %v1124_v2  ;;  %v1306_v2 = vmul.f32 %v1304_v10, %v2701_v61  ;;  %p1959_p6 = scmp.lt.s32.totalorder %s2861_s30, %s1957_s24 }
 0x231   : > { %1571 = vrot.lane.b32.xlu1 %v1566_v27, %s2052_s26  ;;  %s1814_s26 = sshll.u32 %s2030_s12, 8  ;;  %s1952_s12 = scalar_lea.vmem %s2861_s30, 256 }
 0x232   : > { %s2859_s18 = scalar_lea.hbm %s2913_s2, %s1814_s26  ;;  %p1953_p8 = scmp.ne.s32.totalorder %s2861_s30, %s1952_s12 }
 0x233   : > { %v1148_v28 = vpop.permute.xlu1 %1147  ;;  %v1160_v29 = vpop.permute.xlu0 %1159  ;;  %p1960_p1 = scmp.lt.s32.totalorder %s1958_s29, %s1952_s12 }
 0x234   : > { %v1165_v37 = vadd.f32 %v1160_v29, %v1151_v15  ;;  %v1152_v41 = vadd.f32 %v1148_v28, %v1138_v7  ;;  %p1954_p0 = pnand %p1953_p8, %p2926_p13 }
 0x235   : > { %p1961_p7 = por %p1960_p1, %p1959_p6 }
 0x236   : > { %p1955_p2 = pneg %p1954_p0 }
 0x237   : > { %v1162_v8 = vpop.permute.xlu1 %1161  ;;  %v1174_v34 = vpop.permute.xlu0 %1173 }
 0x238   : > { %v1179_v18 = vadd.f32 %v1174_v34, %v1165_v37  ;;  %v1166_v44 = vadd.f32 %v1162_v8, %v1152_v41  ;;  %p1962_p12 = pnand %p1961_p7, %p1955_p2 }
 0x23b   : > { %v1176_v38 = vpop.permute.xlu1 %1175  ;;  %v1188_v39 = vpop.permute.xlu0 %1187 }
 0x23c   : > { %v1193_v45 = vadd.f32 %v1188_v39, %v1179_v18  ;;  %v1180_v25 = vadd.f32 %v1176_v38, %v1166_v44  ;;  %v1396_v18 = vstv %s1794_s23 }
 0x23f   : > { %v1190_v46 = vpop.permute.xlu1 %1189  ;;  %v1202_v47 = vpop.permute.xlu0 %1201 }
 0x240   : > { %v1207_v35 = vadd.f32 %v1202_v47, %v1193_v45  ;;  %v1194_v49 = vadd.f32 %v1190_v46, %v1180_v25  ;;  %v1397_v25 = vmul.f32 %v1396_v18, %v2743_v43 }
 0x242   : > { %v1215_v53 = vadd.f32 %v1213_v48, %v1207_v35 }
 0x243   : > { %v1204_v54 = vpop.permute.xlu1 %1203  ;;  %v1224_v56 = vpop.permute.xlu0 %1223 }
 0x244   : > { %v1208_v33 = vadd.f32 %v1204_v54, %v1194_v49  ;;  %v1229_v9 = vadd.f32 %v1224_v56, %v1215_v53  ;;  %v1398_v56 = vmul.f32 %v1396_v18, %v2752_v52 }
 0x246   : > { %v1216_v57 = vadd.f32 %v1214_v36, %v1208_v33 }
 0x247   : > { %v1226_v59 = vpop.permute.xlu1 %1225  ;;  %v1238_v62 = vpop.permute.xlu0 %1237 }
 0x248   : > { %v1243_v3 = vadd.f32 %v1238_v62, %v1229_v9  ;;  %v1230_v4 = vadd.f32 %v1226_v59, %v1216_v57 }
 0x24b   : > { %v1240_v63 = vpop.permute.xlu1 %1239  ;;  %v1252_v0 = vpop.permute.xlu0 %1251 }
 0x24c   : > { %v1257_v5 = vadd.f32 %v1252_v0, %v1243_v3  ;;  %v1244_v51 = vadd.f32 %v1240_v63, %v1230_v4 }
 0x24f   : > { %v1254_v40 = vpop.permute.xlu1 %1253  ;;  %v1266_v60 = vpop.permute.xlu0 %1265 }
 0x250   : > { %v1271_v14 = vadd.f32 %v1266_v60, %v1257_v5  ;;  %v1258_v12 = vadd.f32 %v1254_v40, %v1244_v51 }
 0x253   : > { %v1268_v58 = vpop.permute.xlu1 %1267  ;;  %v1280_v6 = vpop.permute.xlu0 %1279 }
 0x254   : > { %v1285_v13 = vadd.f32 %v1280_v6, %v1271_v14  ;;  %v1272_v17 = vadd.f32 %v1268_v58, %v1258_v12  ;;  %v1488_v6 = vstv %s1801_s28 }
 0x257   : > { %v1282_v1 = vpop.permute.xlu1 %1281  ;;  %v1294_v16 = vpop.permute.xlu0 %1293 }
 0x258   : > { %v1299_v31 = vadd.f32 %v1294_v16, %v1285_v13  ;;  %v1286_v20 = vadd.f32 %v1282_v1, %v1272_v17  ;;  %v1489_v1 = vmul.f32 %v1488_v6, %v2794_v32 }
 0x25a   : > { %v1307_v21 = vadd.f32 %v1305_v55, %v1299_v31 }
 0x25b   : > { %v1296_v22 = vpop.permute.xlu1 %1295  ;;  %v1316_v23 = vpop.permute.xlu0 %1315 }
 0x25c   : > { %v1300_v24 = vadd.f32 %v1296_v22, %v1286_v20  ;;  %v1321_v30 = vadd.f32 %v1316_v23, %v1307_v21  ;;  %v1490_v21 = vmul.f32 %v1488_v6, %v2803_v42 }
 0x25e   : > { %v1308_v11 = vadd.f32 %v1306_v2, %v1300_v24 }
 0x25f   : > { %v1318_v26 = vpop.permute.xlu1 %1317  ;;  %v1330_v27 = vpop.permute.xlu0 %1329 }
 0x260   : > { %v1335_v15 = vadd.f32 %v1330_v27, %v1321_v30  ;;  %v1322_v7 = vadd.f32 %v1318_v26, %v1308_v11 }
 0x263   : > { %v1332_v28 = vpop.permute.xlu1 %1331  ;;  %v1344_v29 = vpop.permute.xlu0 %1343 }
 0x264   : > { %v1349_v37 = vadd.f32 %v1344_v29, %v1335_v15  ;;  %v1336_v39 = vadd.f32 %v1332_v28, %v1322_v7 }
 0x267   : > { %v1346_v8 = vpop.permute.xlu1 %1345  ;;  %v1358_v34 = vpop.permute.xlu0 %1357 }
 0x268   : > { %v1363_v41 = vadd.f32 %v1358_v34, %v1349_v37  ;;  %v1350_v19 = vadd.f32 %v1346_v8, %v1336_v39 }
 0x26b   : > { %v1360_v50 = vpop.permute.xlu1 %1359  ;;  %v1372_v38 = vpop.permute.xlu0 %1371 }
 0x26c   : > { %v1377_v44 = vadd.f32 %v1372_v38, %v1363_v41  ;;  %v1364_v46 = vadd.f32 %v1360_v50, %v1350_v19 }
 0x26f   : > { %v1374_v61 = vpop.permute.xlu1 %1373  ;;  %v1386_v45 = vpop.permute.xlu0 %1385 }
 0x270   : > { %v1391_v47 = vadd.f32 %v1386_v45, %v1377_v44  ;;  %v1378_v35 = vadd.f32 %v1374_v61, %v1364_v46 }
 0x272   : > { %v1399_v48 = vadd.f32 %v1397_v25, %v1391_v47 }
 0x273   : > { %v1388_v49 = vpop.permute.xlu1 %1387  ;;  %v1408_v53 = vpop.permute.xlu0 %1407 }
 0x274   : > { %v1392_v54 = vadd.f32 %v1388_v49, %v1378_v35  ;;  %v1413_v63 = vadd.f32 %v1408_v53, %v1399_v48 }
 0x276   : > { %v1400_v33 = vadd.f32 %v1398_v56, %v1392_v54 }
 0x277   : > { %v1410_v36 = vpop.permute.xlu1 %1409  ;;  %v1422_v57 = vpop.permute.xlu0 %1421 }
 0x278   : > { %v1427_v40 = vadd.f32 %v1422_v57, %v1413_v63  ;;  %v1414_v60 = vadd.f32 %v1410_v36, %v1400_v33 }
 0x27b   : > { %v1424_v59 = vpop.permute.xlu1 %1423  ;;  %v1436_v62 = vpop.permute.xlu0 %1435 }
 0x27c   : > { %v1441_v3 = vadd.f32 %v1436_v62, %v1427_v40  ;;  %v1428_v5 = vadd.f32 %v1424_v59, %v1414_v60 }
 0x27f   : > { %v1438_v0 = vpop.permute.xlu1 %1437  ;;  %v1450_v9 = vpop.permute.xlu0 %1449 }
 0x280   : > { %v1455_v58 = vadd.f32 %v1450_v9, %v1441_v3  ;;  %v1442_v51 = vadd.f32 %v1438_v0, %v1428_v5 }
 0x283   : > { %v1452_v43 = vpop.permute.xlu1 %1451  ;;  %v1464_v4 = vpop.permute.xlu0 %1463 }
 0x284   : > { %v1469_v14 = vadd.f32 %v1464_v4, %v1455_v58  ;;  %v1456_v12 = vadd.f32 %v1452_v43, %v1442_v51 }
 0x287   : > { %v1466_v52 = vpop.permute.xlu1 %1465  ;;  %v1478_v10 = vpop.permute.xlu0 %1477 }
 0x288   : > { %v1483_v13 = vadd.f32 %v1478_v10, %v1469_v14  ;;  %v1470_v16 = vadd.f32 %v1466_v52, %v1456_v12 }
 0x28a   : > { %v1491_v17 = vadd.f32 %v1489_v1, %v1483_v13 }
 0x28b   : > { %v1480_v31 = vpop.permute.xlu1 %1479  ;;  %v1500_v55 = vpop.permute.xlu0 %1499 }
 0x28c   : > { %v1484_v20 = vadd.f32 %v1480_v31, %v1470_v16  ;;  %v1505_v26 = vadd.f32 %v1500_v55, %v1491_v17 }
 0x28e   : > { %v1492_v22 = vadd.f32 %v1490_v21, %v1484_v20 }
 0x28f   : > { %v1502_v23 = vpop.permute.xlu1 %1501  ;;  %v1514_v24 = vpop.permute.xlu0 %1513 }
 0x290   : > { %v1519_v29 = vadd.f32 %v1514_v24, %v1505_v26  ;;  %v1506_v30 = vadd.f32 %v1502_v23, %v1492_v22 }
 0x293   : > { %v1516_v2 = vpop.permute.xlu1 %1515  ;;  %v1528_v11 = vpop.permute.xlu0 %1527 }
 0x294   : > { %v1533_v8 = vadd.f32 %v1528_v11, %v1519_v29  ;;  %v1520_v15 = vadd.f32 %v1516_v2, %v1506_v30 }
 0x297   : > { %v1530_v27 = vpop.permute.xlu1 %1529  ;;  %v1542_v28 = vpop.permute.xlu0 %1541 }
 0x298   : > { %v1547_v7 = vadd.f32 %v1542_v28, %v1533_v8  ;;  %v1534_v37 = vadd.f32 %v1530_v27, %v1520_v15 }
 0x29b   : > { %v1544_v34 = vpop.permute.xlu1 %1543  ;;  %v1556_v32 = vpop.permute.xlu0 %1555 }
 0x29c   : > { %v1561_v50 = vadd.f32 %v1556_v32, %v1547_v7  ;;  %v1548_v42 = vadd.f32 %v1544_v34, %v1534_v37 }
 0x29f   : > { %v1558_v38 = vpop.permute.xlu1 %1557  ;;  %v1570_v39 = vpop.permute.xlu0 %1569 }
 0x2a0   : > { %v1575_v41 = vadd.f32 %v1570_v39, %v1561_v50  ;;  %v1562_v18 = vadd.f32 %v1558_v38, %v1548_v42 }
 0x2a2   : > { %v1577_v19 = vsub.f32 0.0, %v1575_v41 }
 0x2a3   : > { %v1572_v44 = vpop.permute.xlu1 %1571 }
 0x2a4   : > { %v1579_v61 = vmul.f32 1.442695, %v1577_v19  ;;  %v1576_v45 = vadd.f32 %v1572_v44, %v1562_v18 }
 0x2a6   : > { %1901 = vpow2.f32 %v1579_v61  ;;  %v1578_v46 = vsub.f32 0.0, %v1576_v45 }
 0x2a8   : > { %v1581_v47 = vmul.f32 1.442695, %v1578_v46 }
 0x2aa   : > { %1903 = vpow2.f32 %v1581_v47 }
 0x2b0   : > { %v1902_v25 = vpop.eup %1901 }
 0x2b1   : > { %v1583_v35 = vadd.f32 1.0, %v1902_v25 }
 0x2b3   : > { %1905 = vrcp.f32 %v1583_v35 }
 0x2b4   : > { %v1904_v48 = vpop.eup %1903 }
 0x2b5   : > { %v1584_v49 = vadd.f32 1.0, %v1904_v48 }
 0x2b7   : > { %1907 = vrcp.f32 %v1584_v49 }
 0x2bd   : > { %v1906_v53 = vpop.eup %1905 }
 0x2be   : > { %1587 = vst.msk [vmem:[%s190_s27] sm:$0xff] %vm196_vm0, %v1906_v53 }
 0x2c1   : > { %v1908_v54 = vpop.eup %1907 }
 0x2c2   : > { %1588 = vst.msk [vmem:[%s190_s27 + $0x8] sm:$0xff] %vm196_vm0, %v1908_v54 }
 0x2c3   : > { %1965 = shalt.err (!%p1962_p12)
}
 0x2c4   : > { %s1966_s5 = scalar_lea.hbm %s2859_s18, 256  ;;  %s1970_s16 = scalar_lea.hbm %s2913_s2, 512 }
 0x2c5   : > { %p1967_p4 = scmp.ne.s32.totalorder %s2859_s18, %s1966_s5  ;;  %p1971_p5 = scmp.lt.u32.totalorder %s2859_s18, %s2913_s2 }
 0x2c6   : > { %p1972_p9 = scmp.lt.u32.totalorder %s1970_s16, %s1966_s5  ;;  %p1974_p8 = scmp.lt.u32.totalorder %s1966_s5, %s2859_s18 }
 0x2c7   : > { %p1968_p10 = pnand %p1967_p4, %p2926_p13 }
 0x2c8   : > { %p1973_p3 = por %p1972_p9, %p1971_p5 }
 0x2c9   : > { %p1969_p11 = pneg %p1968_p10 }
 0x2ca   : > { %p1975_p0 = por %p1974_p8, %p1973_p3 }
 0x2cc   : > { %p1976_p2 = pnand %p1975_p0, %p1969_p11 }
 0x2ce   : > { %1979 = shalt.err (!%p1976_p2)
}
 0x2cf   : > { %s2054_s6 = smov 128   ;;  %s2055_s26 = smov 8  }
 0x2d0   : > { %1821 = dma.vmem_to_hbm [thread:$0]  (%p2926_p13), %s2861_s30, 256, %s2859_s18, %s1590_s19, %s2054_s6, %s2054_s6, %s2055_s26  }
 0x2d1 PF: > { %s1618_s27 = sand.u32 1, %s2018_s9   ;;  %p2927_p6 = scmp.ne.s32.totalorder %s2921_s21, 0 }
 0x2d2   : > { %p2928_p1 = scmp.ge.s32.totalorder %s2038_s14, 2  ;;  %s1619_s8 = scalar_lea.sflag [#allocation7], %s1618_s27 }
 0x2d4   : > { %p1832_p7 = pnand %p2928_p1, %p2927_p6 }
 0x2d6   : > { %2013 = dma.done.wait (!%p1832_p7), %s1619_s8, 256  }
 0x2d7   : > { %2015 = vsyncadd (!%p1832_p7), %s1619_s8, 4294967040  ;;  %s19_s14 = sadd.s32 1, %s2038_s14   ;;  %s2929_s9 = smov %s2022_s10 }
 0x2d8   : > { %p16_p12 = scmp.ge.s32.totalorder %s19_s14, 4   ;;  %s2930_s10 = smov %s2026_s11 }
 0x2d9   : > { %s2931_s11 = smov %s2172_s4  ;;  %s2932_s12 = smov %s2034_s13 }
 0x2da   : > { %s2933_s13 = smov %s2935_s25  ;;  %18 = sbr.rel (!%p16_p12) target bundleno = 7 (0x7), region = 87 }
 0x2e1   :  { %1624 = vsyncpa [#allocation6], 1 }
 0x2e2   :  { %1626 = vsyncpa [#allocation6 + $0x1], 1 }
 0x2e3   :  { %1627 = vsyncpa [#allocation7], 1 }
 0x2e4   :  { %1629 = vsyncpa [#allocation7 + $0x1], 1 }
 0x2e5   :  { %1630 = vsyncpa [#allocation8], 1 }
 0x2e6   :  { %1632 = vsyncpa [#allocation8 + $0x1], 1 }

</bundles_post_ra>
